<compile_context>
chip_gen: v5e
topology: v5e:2x2
jax: 0.10.0
libtpu: 0.0.40
codegen_flags: <defaults>
</compile_context>

<pallas_src>
import functools
import math

import jax
import jax.numpy as jnp
from jax.experimental import pallas as pl
from jax.experimental.pallas import tpu as pltpu


# ---------------------------------------------------------------------------
# In-kernel helpers
# ---------------------------------------------------------------------------
def _layer_norm(x, gamma, beta, eps=1e-12):
    # Matches the PyTorch LayerNorm in the spec: mean / biased var over last dim.
    mean = jnp.mean(x, axis=-1, keepdims=True)
    centered = x - mean
    var = jnp.mean(centered * centered, axis=-1, keepdims=True)
    return gamma * (centered * jax.lax.rsqrt(var + eps)) + beta


# ---------------------------------------------------------------------------
# Fused encoder-layer kernel
# ---------------------------------------------------------------------------
def _encoder_layer_kernel(x_ref, bias_ref,
                          wq_ref, wk_ref, wv_ref, wc_ref,
                          ln1_g_ref, ln1_b_ref,
                          w1_ref, b1_ref, w2_ref, b2_ref,
                          ln2_g_ref, ln2_b_ref,
                          o_ref, *, n_head: int, bt: int, seq_len: int):
    D = x_ref.shape[-1]
    dt = D // n_head
    R = bt * seq_len           # activation rows per grid step
    X = n_head * bt            # batched-attention "batch" size (head-major)

    # (bt, L, D) -> (R, D): leading-dim collapse, lane dim untouched.
    x = x_ref[...].reshape(R, D)                        # f32 residual stream
    xb = x.astype(jnp.bfloat16)

    # --- attention projections: lane-dense MXU matmuls, bf16 in / f32 acc.
    # 1/sqrt(dt) is already folded into wq at param-prep time.  Cast straight
    # to bf16 so no f32 copy of Q/K/V stays live.
    q = jnp.dot(xb, wq_ref[...], preferred_element_type=jnp.float32).astype(jnp.bfloat16)
    k = jnp.dot(xb, wk_ref[...], preferred_element_type=jnp.float32).astype(jnp.bfloat16)
    v = jnp.dot(xb, wv_ref[...], preferred_element_type=jnp.float32).astype(jnp.bfloat16)

    def split_heads(t):        # (R, D) -> (X, L, dt), head-major along X
        parts = [t[:, h * dt:(h + 1) * dt] for h in range(n_head)]
        return jnp.concatenate(parts, axis=0).reshape(X, seq_len, dt)

    q3, k3, v3 = split_heads(q), split_heads(k), split_heads(v)

    # --- one batched score matmul for all (head, batch) pairs ---------------
    s = jnp.einsum('xqd,xkd->xqk', q3, k3,
                   preferred_element_type=jnp.float32)            # (X, L, L) f32

    # Additive key-padding bias (0 keep / -1e4 masked), broadcast over query
    # rows; tiled head-major to match the X ordering of q3/k3/v3.
    s = s + jnp.tile(bias_ref[...], (n_head, 1, 1))               # (X, 1, L) bias

    s = s - jnp.max(s, axis=-1, keepdims=True)
    p = jnp.exp(s)
    denom = jnp.sum(p, axis=-1, keepdims=True)
    # Exact reciprocal (EUP path; tiny (X, L, 1) tensor) for tighter softmax
    # parity with the PyTorch reference.
    a = p * pl.reciprocal(denom, approx=False)

    ctx3 = jnp.einsum('xqk,xkd->xqd', a.astype(jnp.bfloat16), v3,
                      preferred_element_type=jnp.float32).astype(jnp.bfloat16)

    # Merge heads back to (R, D): leading-dim slices + one lane-dim concat.
    ctx = jnp.concatenate(
        [ctx3[h * bt:(h + 1) * bt].reshape(R, dt) for h in range(n_head)],
        axis=-1)                                                   # (R, D) bf16

    # --- output projection + residual + LayerNorm 1 --------------------------
    attn_out = jnp.dot(ctx, wc_ref[...], preferred_element_type=jnp.float32)
    h1 = _layer_norm(x + attn_out, ln1_g_ref[...], ln1_b_ref[...])

    # --- position-wise FFN + residual + LayerNorm 2 ---------------------------
    # TODO(synk): at realistic (R, Hf) sizes, chunk over Hf with an f32 VMEM
    # accumulator so the hidden activation never exceeds v7x's 64 MiB VMEM.
    f = jnp.dot(h1.astype(jnp.bfloat16), w1_ref[...],
                preferred_element_type=jnp.float32)
    f = jnp.maximum(f + b1_ref[...], 0.0).astype(jnp.bfloat16)     # bf16-only hidden
    f = jnp.dot(f, w2_ref[...], preferred_element_type=jnp.float32) + b2_ref[...]
    h2 = _layer_norm(h1 + f, ln2_g_ref[...], ln2_b_ref[...])

    # (R, D) -> (bt, L, D): leading-dim expand, lane-dense store (D % 128 == 0).
    o_ref[...] = h2.reshape(bt, seq_len, D).astype(o_ref.dtype)


# ---------------------------------------------------------------------------
# Wrappers
# ---------------------------------------------------------------------------
def _vmem_limit_bytes():
    # Generation-aware VMEM budget: ~3/4 of physical VMEM (128 MiB on v5e/v6e,
    # 64 MiB on v7x); conservative fallback if the query is unavailable.
    try:
        cap = int(pltpu.get_tpu_info().vmem_capacity_bytes)
    except Exception:
        cap = 64 * 1024 * 1024
    return int(cap * 3 // 4)


def encoder_layer(x, mask_bias, lp, *, n_head: int, batch_tile=None):
    """x: (B, L, D) f32, mask_bias: (B, 1, L) f32 additive bias (0 / -1e4),
    lp: dict of pre-transposed / pre-cast layer weights."""
    B, L, D = x.shape
    Hf = lp["w1_t"].shape[1]

    if batch_tile is None:
        # Aim for >= 4 grid steps (>= 2 at B=2) so v7x's two TensorCores both
        # get work and the x/bias DMA pipelines against compute.
        bt = 1
        for cand in range(max(1, B // 4), 0, -1):
            if B % cand == 0:
                bt = cand
                break
    else:
        bt = batch_tile
    assert B % bt == 0 and D % n_head == 0

    kernel = functools.partial(_encoder_layer_kernel,
                               n_head=n_head, bt=bt, seq_len=L)

    x_spec = pl.BlockSpec((bt, L, D), lambda i: (i, 0, 0))
    m_spec = pl.BlockSpec((bt, 1, L), lambda i: (i, 0, 0))

    def rep(shape):
        # Replicated weight/bias block: constant index map -> never re-fetched;
        # Buffered(1) avoids wasting VMEM on a useless second buffer.
        nd = len(shape)
        return pl.BlockSpec(shape, lambda i, _nd=nd: (0,) * _nd,
                            pipeline_mode=pl.Buffered(1))

    return pl.pallas_call(
        kernel,
        out_shape=jax.ShapeDtypeStruct((B, L, D), x.dtype),
        grid_spec=pltpu.PrefetchScalarGridSpec(
            num_scalar_prefetch=0,
            grid=(B // bt,),
            in_specs=[
                x_spec, m_spec,
                rep((D, D)), rep((D, D)), rep((D, D)), rep((D, D)),
                rep((1, D)), rep((1, D)),
                rep((D, Hf)), rep((1, Hf)),
                rep((Hf, D)), rep((1, D)),
                rep((1, D)), rep((1, D)),
            ],
            out_specs=x_spec,
        ),
        compiler_params=pltpu.CompilerParams(
            dimension_semantics=("parallel",),
            vmem_limit_bytes=_vmem_limit_bytes(),
        ),
    )(x, mask_bias,
      lp["wq_t"], lp["wk_t"], lp["wv_t"], lp["wc_t"],
      lp["ln1_g"], lp["ln1_b"],
      lp["w1_t"], lp["b1"],
      lp["w2_t"], lp["b2"],
      lp["ln2_g"], lp["ln2_b"])


def encoder_forward(ids, s_mask, params, *, n_head: int):
    """Full Encoder forward (inference). s_mask: (B, L), 1 = attend / 0 = pad."""
    # TODO(synk): token-embedding gather and the (identity-at-inference) dropout
    # layers are left to XLA; a data-dependent row gather has no clean BlockSpec
    # tiling at this scale.
    B, L = ids.shape
    x = jnp.take(params["tok_emb"], ids, axis=0) + params["pos_emb"][:L][None]
    # masked_fill(mask==0, -10000) realized as an additive -1e4 bias: after the
    # softmax max-subtraction the two are numerically indistinguishable, and a
    # (B, 1, L) bias cuts mask HBM traffic by a factor of L vs a (B, L, L) mask.
    bias = jnp.where(s_mask > 0, 0.0, -10000.0).astype(jnp.float32).reshape(B, 1, L)
    for lp in params["layers"]:
        x = encoder_layer(x, bias, lp, n_head=n_head)
    return x


# ---------------------------------------------------------------------------
# Parameter construction (PyTorch-convention raw params + kernel-ready params)
# ---------------------------------------------------------------------------
def init_raw_params(key, *, vocab, max_len, d_model, ffn_hidden, n_layers,
                    padding_idx):
    keys = jax.random.split(key, 2 + n_layers)
    tok = jax.random.normal(keys[0], (vocab, d_model), jnp.float32)
    tok = tok.at[padding_idx].set(0.0)          # nn.Embedding(padding_idx=...)
    pos = jax.random.normal(keys[1], (max_len, d_model), jnp.float32)
    bd = 1.0 / math.sqrt(d_model)
    bh = 1.0 / math.sqrt(ffn_hidden)
    layers = []
    for li in range(n_layers):
        ks = jax.random.split(keys[2 + li], 12)
        layers.append(dict(
            wq=jax.random.uniform(ks[0], (d_model, d_model), jnp.float32, -bd, bd),
            wk=jax.random.uniform(ks[1], (d_model, d_model), jnp.float32, -bd, bd),
            wv=jax.random.uniform(ks[2], (d_model, d_model), jnp.float32, -bd, bd),
            wc=jax.random.uniform(ks[3], (d_model, d_model), jnp.float32, -bd, bd),
            ln1_g=1.0 + 0.1 * jax.random.normal(ks[4], (d_model,), jnp.float32),
            ln1_b=0.1 * jax.random.normal(ks[5], (d_model,), jnp.float32),
            w1=jax.random.uniform(ks[6], (ffn_hidden, d_model), jnp.float32, -bd, bd),
            b1=jax.random.uniform(ks[7], (ffn_hidden,), jnp.float32, -bd, bd),
            w2=jax.random.uniform(ks[8], (d_model, ffn_hidden), jnp.float32, -bh, bh),
            b2=jax.random.uniform(ks[9], (d_model,), jnp.float32, -bh, bh),
            ln2_g=1.0 + 0.1 * jax.random.normal(ks[10], (d_model,), jnp.float32),
            ln2_b=0.1 * jax.random.normal(ks[11], (d_model,), jnp.float32),
        ))
    return dict(tok_emb=tok, pos_emb=pos, layers=layers)


def prepare_kernel_params(raw, *, n_head):
    """Hoisted once, outside the forward: PyTorch Linear stores W as (out, in)
    and computes y = x @ W.T -> pre-transpose, pre-cast MXU operands to bf16,
    and fold the 1/sqrt(d_tensor) attention scale into w_q."""
    d_model = raw["tok_emb"].shape[1]
    scale = 1.0 / math.sqrt(d_model // n_head)
    layers = []
    for lp in raw["layers"]:
        layers.append(dict(
            wq_t=jnp.asarray(lp["wq"].T * scale, jnp.bfloat16),
            wk_t=jnp.asarray(lp["wk"].T, jnp.bfloat16),
            wv_t=jnp.asarray(lp["wv"].T, jnp.bfloat16),
            wc_t=jnp.asarray(lp["wc"].T, jnp.bfloat16),
            ln1_g=lp["ln1_g"].reshape(1, -1),
            ln1_b=lp["ln1_b"].reshape(1, -1),
            w1_t=jnp.asarray(lp["w1"].T, jnp.bfloat16),
            b1=lp["b1"].reshape(1, -1),
            w2_t=jnp.asarray(lp["w2"].T, jnp.bfloat16),
            b2=lp["b2"].reshape(1, -1),
            ln2_g=lp["ln2_g"].reshape(1, -1),
            ln2_b=lp["ln2_b"].reshape(1, -1),
        ))
    return dict(tok_emb=raw["tok_emb"], pos_emb=raw["pos_emb"], layers=layers)


# ---------------------------------------------------------------------------
# Pure-JAX f32 reference (PyTorch semantics) for verification
# ---------------------------------------------------------------------------
def _layer_norm_ref(x, gamma, beta, eps=1e-12):
    mean = jnp.mean(x, axis=-1, keepdims=True)
    var = jnp.mean((x - mean) ** 2, axis=-1, keepdims=True)
    return gamma * (x - mean) / jnp.sqrt(var + eps) + beta


def _encoder_ref(ids, s_mask, raw, *, n_head):
    B, L = ids.shape
    x = raw["tok_emb"][ids] + raw["pos_emb"][:L][None]
    D = x.shape[-1]
    dt = D // n_head

    def lin(t, w, b=None):
        y = jnp.einsum("bld,od->blo", t, w)
        return y if b is None else y + b

    def split(t):
        return t.reshape(B, L, n_head, dt).transpose(0, 2, 1, 3)

    for lp in raw["layers"]:
        q, k, v = split(lin(x, lp["wq"])), split(lin(x, lp["wk"])), split(lin(x, lp["wv"]))
        score = jnp.einsum("bhqd,bhkd->bhqk", q, k) / math.sqrt(dt)
        score = jnp.where(s_mask[:, None, None, :] == 0, -10000.0, score)
        attn = jax.nn.softmax(score, axis=-1)
        ctx = jnp.einsum("bhqk,bhkd->bhqd", attn, v)
        ctx = ctx.transpose(0, 2, 1, 3).reshape(B, L, D)
        x = _layer_norm_ref(x + lin(ctx, lp["wc"]), lp["ln1_g"], lp["ln1_b"])
        f = jnp.maximum(lin(x, lp["w1"], lp["b1"]), 0.0)
        f = lin(f, lp["w2"], lp["b2"])
        x = _layer_norm_ref(x + f, lp["ln2_g"], lp["ln2_b"])
    return x


# ---------------------------------------------------------------------------
if __name__ == "__main__":
    B, L = 2, 8
    d_model, n_head, ffn_hidden, n_layers = 128, 4, 256, 2   # lane-dense dims
    vocab, max_len, padding_idx = 64, 16, 0

    key = jax.random.PRNGKey(0)
    k_param, k_ids = jax.random.split(key)

    raw = init_raw_params(k_param, vocab=vocab, max_len=max_len,
                          d_model=d_model, ffn_hidden=ffn_hidden,
                          n_layers=n_layers, padding_idx=padding_idx)
    prep = prepare_kernel_params(raw, n_head=n_head)

    # Token ids + source key-padding mask (batch 1 is padded to length 5).
    lengths = jnp.array([L, 5], dtype=jnp.int32)
    valid = (jnp.arange(L)[None, :] < lengths[:, None])        # (B, L) bool
    ids = jax.random.randint(k_ids, (B, L), 1, vocab, dtype=jnp.int32)
    ids = jnp.where(valid, ids, padding_idx)
    s_mask = valid.astype(jnp.float32)                          # (B, L) 1 keep / 0 pad

    fwd = jax.jit(functools.partial(encoder_forward, n_head=n_head))
    out = jax.block_until_ready(fwd(ids, s_mask, prep))

    ref = _encoder_ref(ids, s_mask, raw, n_head=n_head)
    assert out.shape == (B, L, d_model)
    err = float(jnp.max(jnp.abs(out - ref)))
    # bf16 MXU operands with f32 accumulation -> relaxed tolerance vs f32 ref.
    assert jnp.allclose(out, ref, atol=5e-2, rtol=5e-2), f"max abs err {err}"

    print("KERNEL_OK")
</pallas_src>

<mosaic_0001>
module attributes {stable_mosaic.version = 11 : i64} {
  func.func @_encoder_layer_kernel(%arg0: i32, %arg1: memref<1x8x128xf32, #tpu.memory_space<vmem>>, %arg2: memref<1x1x8xf32, #tpu.memory_space<vmem>>, %arg3: memref<128x128xbf16, #tpu.memory_space<vmem>>, %arg4: memref<128x128xbf16, #tpu.memory_space<vmem>>, %arg5: memref<128x128xbf16, #tpu.memory_space<vmem>>, %arg6: memref<128x128xbf16, #tpu.memory_space<vmem>>, %arg7: memref<1x128xf32, #tpu.memory_space<vmem>>, %arg8: memref<1x128xf32, #tpu.memory_space<vmem>>, %arg9: memref<128x256xbf16, #tpu.memory_space<vmem>>, %arg10: memref<1x256xf32, #tpu.memory_space<vmem>>, %arg11: memref<256x128xbf16, #tpu.memory_space<vmem>>, %arg12: memref<1x128xf32, #tpu.memory_space<vmem>>, %arg13: memref<1x128xf32, #tpu.memory_space<vmem>>, %arg14: memref<1x128xf32, #tpu.memory_space<vmem>>, %arg15: memref<1x8x128xf32, #tpu.memory_space<vmem>>) attributes {dimension_semantics = [#tpu.dimension_semantics<parallel>], iteration_bounds = array<i64: 2>, scalar_prefetch = 0 : i64, scratch_operands = 0 : i64, tpu.core_type = #tpu.core_type<tc>, window_params = [{transform_indices = @transform_0, window_bounds = array<i64: 1, 8, 128>}, {transform_indices = @transform_1, window_bounds = array<i64: 1, 1, 8>}, {pipeline_mode = #tpu.pipeline_mode<synchronous>, transform_indices = @transform_2, window_bounds = array<i64: 128, 128>}, {pipeline_mode = #tpu.pipeline_mode<synchronous>, transform_indices = @transform_3, window_bounds = array<i64: 128, 128>}, {pipeline_mode = #tpu.pipeline_mode<synchronous>, transform_indices = @transform_4, window_bounds = array<i64: 128, 128>}, {pipeline_mode = #tpu.pipeline_mode<synchronous>, transform_indices = @transform_5, window_bounds = array<i64: 128, 128>}, {pipeline_mode = #tpu.pipeline_mode<synchronous>, transform_indices = @transform_6, window_bounds = array<i64: 1, 128>}, {pipeline_mode = #tpu.pipeline_mode<synchronous>, transform_indices = @transform_7, window_bounds = array<i64: 1, 128>}, {pipeline_mode = #tpu.pipeline_mode<synchronous>, transform_indices = @transform_8, window_bounds = array<i64: 128, 256>}, {pipeline_mode = #tpu.pipeline_mode<synchronous>, transform_indices = @transform_9, window_bounds = array<i64: 1, 256>}, {pipeline_mode = #tpu.pipeline_mode<synchronous>, transform_indices = @transform_10, window_bounds = array<i64: 256, 128>}, {pipeline_mode = #tpu.pipeline_mode<synchronous>, transform_indices = @transform_11, window_bounds = array<i64: 1, 128>}, {pipeline_mode = #tpu.pipeline_mode<synchronous>, transform_indices = @transform_12, window_bounds = array<i64: 1, 128>}, {pipeline_mode = #tpu.pipeline_mode<synchronous>, transform_indices = @transform_13, window_bounds = array<i64: 1, 128>}, {transform_indices = @transform_14, window_bounds = array<i64: 1, 8, 128>}]} {
    %c0 = arith.constant 0 : index
    %c0_0 = arith.constant 0 : index
    %c0_1 = arith.constant 0 : index
    %0 = vector.load %arg1[%c0, %c0_0, %c0_1] : memref<1x8x128xf32, #tpu.memory_space<vmem>>, vector<1x8x128xf32>
    %1 = vector.shape_cast %0 : vector<1x8x128xf32> to vector<8x128xf32>
    %2 = arith.truncf %1 : vector<8x128xf32> to vector<8x128xbf16>
    %c0_2 = arith.constant 0 : index
    %c0_3 = arith.constant 0 : index
    %3 = vector.load %arg3[%c0_2, %c0_3] : memref<128x128xbf16, #tpu.memory_space<vmem>>, vector<128x128xbf16>
    %cst = arith.constant dense<0.000000e+00> : vector<8x128xf32>
    %4 = tpu.matmul %2, %3, %cst {dimension_numbers = #tpu.dot_dimension_numbers<[1], [0], [0], [1], [0, 0, 1, 1], [], []>} : vector<8x128xbf16>, vector<128x128xbf16>, vector<8x128xf32> -> vector<8x128xf32>
    %5 = arith.truncf %4 : vector<8x128xf32> to vector<8x128xbf16>
    %c0_4 = arith.constant 0 : index
    %c0_5 = arith.constant 0 : index
    %6 = vector.load %arg4[%c0_4, %c0_5] : memref<128x128xbf16, #tpu.memory_space<vmem>>, vector<128x128xbf16>
    %cst_6 = arith.constant dense<0.000000e+00> : vector<8x128xf32>
    %7 = tpu.matmul %2, %6, %cst_6 {dimension_numbers = #tpu.dot_dimension_numbers<[1], [0], [0], [1], [0, 0, 1, 1], [], []>} : vector<8x128xbf16>, vector<128x128xbf16>, vector<8x128xf32> -> vector<8x128xf32>
    %8 = arith.truncf %7 : vector<8x128xf32> to vector<8x128xbf16>
    %c0_7 = arith.constant 0 : index
    %c0_8 = arith.constant 0 : index
    %9 = vector.load %arg5[%c0_7, %c0_8] : memref<128x128xbf16, #tpu.memory_space<vmem>>, vector<128x128xbf16>
    %cst_9 = arith.constant dense<0.000000e+00> : vector<8x128xf32>
    %10 = tpu.matmul %2, %9, %cst_9 {dimension_numbers = #tpu.dot_dimension_numbers<[1], [0], [0], [1], [0, 0, 1, 1], [], []>} : vector<8x128xbf16>, vector<128x128xbf16>, vector<8x128xf32> -> vector<8x128xf32>
    %11 = arith.truncf %10 : vector<8x128xf32> to vector<8x128xbf16>
    %12 = vector.extract_strided_slice %5 {offsets = [0, 0], sizes = [8, 32], strides = [1, 1]} : vector<8x128xbf16> to vector<8x32xbf16>
    %13 = vector.extract_strided_slice %5 {offsets = [0, 32], sizes = [8, 32], strides = [1, 1]} : vector<8x128xbf16> to vector<8x32xbf16>
    %14 = vector.extract_strided_slice %5 {offsets = [0, 64], sizes = [8, 32], strides = [1, 1]} : vector<8x128xbf16> to vector<8x32xbf16>
    %15 = vector.extract_strided_slice %5 {offsets = [0, 96], sizes = [8, 32], strides = [1, 1]} : vector<8x128xbf16> to vector<8x32xbf16>
    %16 = tpu.concatenate %12, %13, %14, %15 in 0 : vector<8x32xbf16>, vector<8x32xbf16>, vector<8x32xbf16>, vector<8x32xbf16> -> vector<32x32xbf16>
    %17 = vector.shape_cast %16 : vector<32x32xbf16> to vector<4x8x32xbf16>
    %18 = vector.extract_strided_slice %8 {offsets = [0, 0], sizes = [8, 32], strides = [1, 1]} : vector<8x128xbf16> to vector<8x32xbf16>
    %19 = vector.extract_strided_slice %8 {offsets = [0, 32], sizes = [8, 32], strides = [1, 1]} : vector<8x128xbf16> to vector<8x32xbf16>
    %20 = vector.extract_strided_slice %8 {offsets = [0, 64], sizes = [8, 32], strides = [1, 1]} : vector<8x128xbf16> to vector<8x32xbf16>
    %21 = vector.extract_strided_slice %8 {offsets = [0, 96], sizes = [8, 32], strides = [1, 1]} : vector<8x128xbf16> to vector<8x32xbf16>
    %22 = tpu.concatenate %18, %19, %20, %21 in 0 : vector<8x32xbf16>, vector<8x32xbf16>, vector<8x32xbf16>, vector<8x32xbf16> -> vector<32x32xbf16>
    %23 = vector.shape_cast %22 : vector<32x32xbf16> to vector<4x8x32xbf16>
    %24 = vector.extract_strided_slice %11 {offsets = [0, 0], sizes = [8, 32], strides = [1, 1]} : vector<8x128xbf16> to vector<8x32xbf16>
    %25 = vector.extract_strided_slice %11 {offsets = [0, 32], sizes = [8, 32], strides = [1, 1]} : vector<8x128xbf16> to vector<8x32xbf16>
    %26 = vector.extract_strided_slice %11 {offsets = [0, 64], sizes = [8, 32], strides = [1, 1]} : vector<8x128xbf16> to vector<8x32xbf16>
    %27 = vector.extract_strided_slice %11 {offsets = [0, 96], sizes = [8, 32], strides = [1, 1]} : vector<8x128xbf16> to vector<8x32xbf16>
    %28 = tpu.concatenate %24, %25, %26, %27 in 0 : vector<8x32xbf16>, vector<8x32xbf16>, vector<8x32xbf16>, vector<8x32xbf16> -> vector<32x32xbf16>
    %29 = vector.shape_cast %28 : vector<32x32xbf16> to vector<4x8x32xbf16>
    "tpu.trace_start"() <{level = 10 : i32, message = "xqd,xkd->xqk"}> : () -> ()
    %cst_10 = arith.constant dense<0.000000e+00> : vector<4x8x8xf32>
    %30 = tpu.matmul %17, %23, %cst_10 {dimension_numbers = #tpu.dot_dimension_numbers<[2], [2], [1], [1], [0, 0, 0, 1, 1, 1], [0], [0]>} : vector<4x8x32xbf16>, vector<4x8x32xbf16>, vector<4x8x8xf32> -> vector<4x8x8xf32>
    "tpu.trace_stop"() : () -> ()
    %c0_11 = arith.constant 0 : index
    %c0_12 = arith.constant 0 : index
    %c0_13 = arith.constant 0 : index
    %31 = vector.load %arg2[%c0_11, %c0_12, %c0_13] : memref<1x1x8xf32, #tpu.memory_space<vmem>>, vector<1x1x8xf32>
    %32 = tpu.concatenate %31, %31, %31, %31 in 0 : vector<1x1x8xf32>, vector<1x1x8xf32>, vector<1x1x8xf32>, vector<1x1x8xf32> -> vector<4x1x8xf32>
    %33 = vector.broadcast %32 : vector<4x1x8xf32> to vector<4x8x8xf32>
    %34 = arith.addf %30, %33 : vector<4x8x8xf32>
    %cst_14 = arith.constant dense<0xFF800000> : vector<4x8xf32>
    %35 = vector.multi_reduction <maximumf>, %34, %cst_14 [2] : vector<4x8x8xf32> to vector<4x8xf32>
    %36 = vector.shape_cast %35 : vector<4x8xf32> to vector<4x8x1xf32>
    %37 = vector.broadcast %36 : vector<4x8x1xf32> to vector<4x8x8xf32>
    %38 = arith.subf %34, %37 : vector<4x8x8xf32>
    %39 = math.exp %38 : vector<4x8x8xf32>
    %cst_15 = arith.constant dense<0.000000e+00> : vector<4x8xf32>
    %40 = vector.multi_reduction <add>, %39, %cst_15 [2] : vector<4x8x8xf32> to vector<4x8xf32>
    %41 = vector.shape_cast %40 : vector<4x8xf32> to vector<4x8x1xf32>
    %42 = tpu.reciprocal %41 : vector<4x8x1xf32> -> vector<4x8x1xf32>
    %43 = vector.broadcast %42 : vector<4x8x1xf32> to vector<4x8x8xf32>
    %44 = arith.mulf %39, %43 : vector<4x8x8xf32>
    %45 = arith.truncf %44 : vector<4x8x8xf32> to vector<4x8x8xbf16>
    "tpu.trace_start"() <{level = 10 : i32, message = "xqk,xkd->xqd"}> : () -> ()
    %cst_16 = arith.constant dense<0.000000e+00> : vector<4x8x32xf32>
    %46 = tpu.matmul %45, %29, %cst_16 {dimension_numbers = #tpu.dot_dimension_numbers<[2], [1], [1], [2], [0, 0, 0, 1, 1, 2], [0], [0]>} : vector<4x8x8xbf16>, vector<4x8x32xbf16>, vector<4x8x32xf32> -> vector<4x8x32xf32>
    "tpu.trace_stop"() : () -> ()
    %47 = arith.truncf %46 : vector<4x8x32xf32> to vector<4x8x32xbf16>
    %48 = vector.extract_strided_slice %47 {offsets = [0, 0, 0], sizes = [1, 8, 32], strides = [1, 1, 1]} : vector<4x8x32xbf16> to vector<1x8x32xbf16>
    %49 = vector.shape_cast %48 : vector<1x8x32xbf16> to vector<8x32xbf16>
    %50 = vector.extract_strided_slice %47 {offsets = [1, 0, 0], sizes = [1, 8, 32], strides = [1, 1, 1]} : vector<4x8x32xbf16> to vector<1x8x32xbf16>
    %51 = vector.shape_cast %50 : vector<1x8x32xbf16> to vector<8x32xbf16>
    %52 = vector.extract_strided_slice %47 {offsets = [2, 0, 0], sizes = [1, 8, 32], strides = [1, 1, 1]} : vector<4x8x32xbf16> to vector<1x8x32xbf16>
    %53 = vector.shape_cast %52 : vector<1x8x32xbf16> to vector<8x32xbf16>
    %54 = vector.extract_strided_slice %47 {offsets = [3, 0, 0], sizes = [1, 8, 32], strides = [1, 1, 1]} : vector<4x8x32xbf16> to vector<1x8x32xbf16>
    %55 = vector.shape_cast %54 : vector<1x8x32xbf16> to vector<8x32xbf16>
    %56 = tpu.concatenate %49, %51, %53, %55 in 1 : vector<8x32xbf16>, vector<8x32xbf16>, vector<8x32xbf16>, vector<8x32xbf16> -> vector<8x128xbf16>
    %c0_17 = arith.constant 0 : index
    %c0_18 = arith.constant 0 : index
    %57 = vector.load %arg6[%c0_17, %c0_18] : memref<128x128xbf16, #tpu.memory_space<vmem>>, vector<128x128xbf16>
    %cst_19 = arith.constant dense<0.000000e+00> : vector<8x128xf32>
    %58 = tpu.matmul %56, %57, %cst_19 {dimension_numbers = #tpu.dot_dimension_numbers<[1], [0], [0], [1], [0, 0, 1, 1], [], []>} : vector<8x128xbf16>, vector<128x128xbf16>, vector<8x128xf32> -> vector<8x128xf32>
    %59 = arith.addf %1, %58 : vector<8x128xf32>
    %c0_20 = arith.constant 0 : index
    %c0_21 = arith.constant 0 : index
    %60 = vector.load %arg7[%c0_20, %c0_21] : memref<1x128xf32, #tpu.memory_space<vmem>>, vector<1x128xf32>
    %c0_22 = arith.constant 0 : index
    %c0_23 = arith.constant 0 : index
    %61 = vector.load %arg8[%c0_22, %c0_23] : memref<1x128xf32, #tpu.memory_space<vmem>>, vector<1x128xf32>
    %cst_24 = arith.constant dense<0.000000e+00> : vector<8xf32>
    %62 = vector.multi_reduction <add>, %59, %cst_24 [1] : vector<8x128xf32> to vector<8xf32>
    %63 = vector.shape_cast %62 : vector<8xf32> to vector<8x1xf32>
    %cst_25 = arith.constant 1.280000e+02 : f32
    %64 = vector.broadcast %cst_25 : f32 to vector<8x1xf32>
    %65 = arith.divf %63, %64 : vector<8x1xf32>
    %66 = vector.broadcast %65 : vector<8x1xf32> to vector<8x128xf32>
    %67 = arith.subf %59, %66 : vector<8x128xf32>
    %68 = arith.mulf %67, %67 : vector<8x128xf32>
    %cst_26 = arith.constant dense<0.000000e+00> : vector<8xf32>
    %69 = vector.multi_reduction <add>, %68, %cst_26 [1] : vector<8x128xf32> to vector<8xf32>
    %70 = vector.shape_cast %69 : vector<8xf32> to vector<8x1xf32>
    %cst_27 = arith.constant 1.280000e+02 : f32
    %71 = vector.broadcast %cst_27 : f32 to vector<8x1xf32>
    %72 = arith.divf %70, %71 : vector<8x1xf32>
    %cst_28 = arith.constant 9.99999996E-13 : f32
    %73 = vector.broadcast %cst_28 : f32 to vector<8x1xf32>
    %74 = arith.addf %72, %73 : vector<8x1xf32>
    %75 = math.rsqrt %74 : vector<8x1xf32>
    %76 = vector.broadcast %75 : vector<8x1xf32> to vector<8x128xf32>
    %77 = arith.mulf %67, %76 : vector<8x128xf32>
    %78 = vector.broadcast %60 : vector<1x128xf32> to vector<8x128xf32>
    %79 = arith.mulf %78, %77 : vector<8x128xf32>
    %80 = vector.broadcast %61 : vector<1x128xf32> to vector<8x128xf32>
    %81 = arith.addf %79, %80 : vector<8x128xf32>
    %82 = arith.truncf %81 : vector<8x128xf32> to vector<8x128xbf16>
    %c0_29 = arith.constant 0 : index
    %c0_30 = arith.constant 0 : index
    %83 = vector.load %arg9[%c0_29, %c0_30] : memref<128x256xbf16, #tpu.memory_space<vmem>>, vector<128x256xbf16>
    %cst_31 = arith.constant dense<0.000000e+00> : vector<8x256xf32>
    %84 = tpu.matmul %82, %83, %cst_31 {dimension_numbers = #tpu.dot_dimension_numbers<[1], [0], [0], [1], [0, 0, 1, 1], [], []>} : vector<8x128xbf16>, vector<128x256xbf16>, vector<8x256xf32> -> vector<8x256xf32>
    %c0_32 = arith.constant 0 : index
    %c0_33 = arith.constant 0 : index
    %85 = vector.load %arg10[%c0_32, %c0_33] : memref<1x256xf32, #tpu.memory_space<vmem>>, vector<1x256xf32>
    %86 = vector.broadcast %85 : vector<1x256xf32> to vector<8x256xf32>
    %87 = arith.addf %84, %86 : vector<8x256xf32>
    %cst_34 = arith.constant 0.000000e+00 : f32
    %88 = vector.broadcast %cst_34 : f32 to vector<8x256xf32>
    %89 = arith.maximumf %87, %88 : vector<8x256xf32>
    %90 = arith.truncf %89 : vector<8x256xf32> to vector<8x256xbf16>
    %c0_35 = arith.constant 0 : index
    %c0_36 = arith.constant 0 : index
    %91 = vector.load %arg11[%c0_35, %c0_36] : memref<256x128xbf16, #tpu.memory_space<vmem>>, vector<256x128xbf16>
    %cst_37 = arith.constant dense<0.000000e+00> : vector<8x128xf32>
    %92 = tpu.matmul %90, %91, %cst_37 {dimension_numbers = #tpu.dot_dimension_numbers<[1], [0], [0], [1], [0, 0, 1, 1], [], []>} : vector<8x256xbf16>, vector<256x128xbf16>, vector<8x128xf32> -> vector<8x128xf32>
    %c0_38 = arith.constant 0 : index
    %c0_39 = arith.constant 0 : index
    %93 = vector.load %arg12[%c0_38, %c0_39] : memref<1x128xf32, #tpu.memory_space<vmem>>, vector<1x128xf32>
    %94 = vector.broadcast %93 : vector<1x128xf32> to vector<8x128xf32>
    %95 = arith.addf %92, %94 : vector<8x128xf32>
    %96 = arith.addf %81, %95 : vector<8x128xf32>
    %c0_40 = arith.constant 0 : index
    %c0_41 = arith.constant 0 : index
    %97 = vector.load %arg13[%c0_40, %c0_41] : memref<1x128xf32, #tpu.memory_space<vmem>>, vector<1x128xf32>
    %c0_42 = arith.constant 0 : index
    %c0_43 = arith.constant 0 : index
    %98 = vector.load %arg14[%c0_42, %c0_43] : memref<1x128xf32, #tpu.memory_space<vmem>>, vector<1x128xf32>
    %cst_44 = arith.constant dense<0.000000e+00> : vector<8xf32>
    %99 = vector.multi_reduction <add>, %96, %cst_44 [1] : vector<8x128xf32> to vector<8xf32>
    %100 = vector.shape_cast %99 : vector<8xf32> to vector<8x1xf32>
    %cst_45 = arith.constant 1.280000e+02 : f32
    %101 = vector.broadcast %cst_45 : f32 to vector<8x1xf32>
    %102 = arith.divf %100, %101 : vector<8x1xf32>
    %103 = vector.broadcast %102 : vector<8x1xf32> to vector<8x128xf32>
    %104 = arith.subf %96, %103 : vector<8x128xf32>
    %105 = arith.mulf %104, %104 : vector<8x128xf32>
    %cst_46 = arith.constant dense<0.000000e+00> : vector<8xf32>
    %106 = vector.multi_reduction <add>, %105, %cst_46 [1] : vector<8x128xf32> to vector<8xf32>
    %107 = vector.shape_cast %106 : vector<8xf32> to vector<8x1xf32>
    %cst_47 = arith.constant 1.280000e+02 : f32
    %108 = vector.broadcast %cst_47 : f32 to vector<8x1xf32>
    %109 = arith.divf %107, %108 : vector<8x1xf32>
    %cst_48 = arith.constant 9.99999996E-13 : f32
    %110 = vector.broadcast %cst_48 : f32 to vector<8x1xf32>
    %111 = arith.addf %109, %110 : vector<8x1xf32>
    %112 = math.rsqrt %111 : vector<8x1xf32>
    %113 = vector.broadcast %112 : vector<8x1xf32> to vector<8x128xf32>
    %114 = arith.mulf %104, %113 : vector<8x128xf32>
    %115 = vector.broadcast %97 : vector<1x128xf32> to vector<8x128xf32>
    %116 = arith.mulf %115, %114 : vector<8x128xf32>
    %117 = vector.broadcast %98 : vector<1x128xf32> to vector<8x128xf32>
    %118 = arith.addf %116, %117 : vector<8x128xf32>
    %119 = vector.shape_cast %118 : vector<8x128xf32> to vector<1x8x128xf32>
    %c0_49 = arith.constant 0 : index
    %c0_50 = arith.constant 0 : index
    %c0_51 = arith.constant 0 : index
    %120 = vector.load %arg15[%c0_49, %c0_50, %c0_51] : memref<1x8x128xf32, #tpu.memory_space<vmem>>, vector<1x8x128xf32>
    tpu.vector_store %arg15[%c0_49, %c0_50, %c0_51], %119 {strides = array<i32>} : memref<1x8x128xf32, #tpu.memory_space<vmem>>, vector<1x8x128xf32>,
    return
  }
  func.func @transform_0(%arg0: i32) -> (i32, i32, i32) {
    %c0_i32 = arith.constant 0 : i32
    %c0_i32_0 = arith.constant 0 : i32
    %c0_i32_1 = arith.constant 0 : i32
    return %arg0, %c0_i32, %c0_i32_0 : i32, i32, i32
  }
  func.func @transform_1(%arg0: i32) -> (i32, i32, i32) {
    %c0_i32 = arith.constant 0 : i32
    %c0_i32_0 = arith.constant 0 : i32
    %c0_i32_1 = arith.constant 0 : i32
    return %arg0, %c0_i32, %c0_i32_0 : i32, i32, i32
  }
  func.func @transform_2(%arg0: i32) -> (i32, i32) {
    %c0_i32 = arith.constant 0 : i32
    %c0_i32_0 = arith.constant 0 : i32
    %c0_i32_1 = arith.constant 0 : i32
    return %c0_i32, %c0_i32_0 : i32, i32
  }
  func.func @transform_3(%arg0: i32) -> (i32, i32) {
    %c0_i32 = arith.constant 0 : i32
    %c0_i32_0 = arith.constant 0 : i32
    %c0_i32_1 = arith.constant 0 : i32
    return %c0_i32, %c0_i32_0 : i32, i32
  }
  func.func @transform_4(%arg0: i32) -> (i32, i32) {
    %c0_i32 = arith.constant 0 : i32
    %c0_i32_0 = arith.constant 0 : i32
    %c0_i32_1 = arith.constant 0 : i32
    return %c0_i32, %c0_i32_0 : i32, i32
  }
  func.func @transform_5(%arg0: i32) -> (i32, i32) {
    %c0_i32 = arith.constant 0 : i32
    %c0_i32_0 = arith.constant 0 : i32
    %c0_i32_1 = arith.constant 0 : i32
    return %c0_i32, %c0_i32_0 : i32, i32
  }
  func.func @transform_6(%arg0: i32) -> (i32, i32) {
    %c0_i32 = arith.constant 0 : i32
    %c0_i32_0 = arith.constant 0 : i32
    %c0_i32_1 = arith.constant 0 : i32
    return %c0_i32, %c0_i32_0 : i32, i32
  }
  func.func @transform_7(%arg0: i32) -> (i32, i32) {
    %c0_i32 = arith.constant 0 : i32
    %c0_i32_0 = arith.constant 0 : i32
    %c0_i32_1 = arith.constant 0 : i32
    return %c0_i32, %c0_i32_0 : i32, i32
  }
  func.func @transform_8(%arg0: i32) -> (i32, i32) {
    %c0_i32 = arith.constant 0 : i32
    %c0_i32_0 = arith.constant 0 : i32
    %c0_i32_1 = arith.constant 0 : i32
    return %c0_i32, %c0_i32_0 : i32, i32
  }
  func.func @transform_9(%arg0: i32) -> (i32, i32) {
    %c0_i32 = arith.constant 0 : i32
    %c0_i32_0 = arith.constant 0 : i32
    %c0_i32_1 = arith.constant 0 : i32
    return %c0_i32, %c0_i32_0 : i32, i32
  }
  func.func @transform_10(%arg0: i32) -> (i32, i32) {
    %c0_i32 = arith.constant 0 : i32
    %c0_i32_0 = arith.constant 0 : i32
    %c0_i32_1 = arith.constant 0 : i32
    return %c0_i32, %c0_i32_0 : i32, i32
  }
  func.func @transform_11(%arg0: i32) -> (i32, i32) {
    %c0_i32 = arith.constant 0 : i32
    %c0_i32_0 = arith.constant 0 : i32
    %c0_i32_1 = arith.constant 0 : i32
    return %c0_i32, %c0_i32_0 : i32, i32
  }
  func.func @transform_12(%arg0: i32) -> (i32, i32) {
    %c0_i32 = arith.constant 0 : i32
    %c0_i32_0 = arith.constant 0 : i32
    %c0_i32_1 = arith.constant 0 : i32
    return %c0_i32, %c0_i32_0 : i32, i32
  }
  func.func @transform_13(%arg0: i32) -> (i32, i32) {
    %c0_i32 = arith.constant 0 : i32
    %c0_i32_0 = arith.constant 0 : i32
    %c0_i32_1 = arith.constant 0 : i32
    return %c0_i32, %c0_i32_0 : i32, i32
  }
  func.func @transform_14(%arg0: i32) -> (i32, i32, i32) {
    %c0_i32 = arith.constant 0 : i32
    %c0_i32_0 = arith.constant 0 : i32
    %c0_i32_1 = arith.constant 0 : i32
    return %arg0, %c0_i32, %c0_i32_0 : i32, i32, i32
  }
}

module attributes {stable_mosaic.version = 11 : i64} {
  func.func @_encoder_layer_kernel(%arg0: i32, %arg1: memref<1x8x128xf32, #tpu.memory_space<vmem>>, %arg2: memref<1x1x8xf32, #tpu.memory_space<vmem>>, %arg3: memref<128x128xbf16, #tpu.memory_space<vmem>>, %arg4: memref<128x128xbf16, #tpu.memory_space<vmem>>, %arg5: memref<128x128xbf16, #tpu.memory_space<vmem>>, %arg6: memref<128x128xbf16, #tpu.memory_space<vmem>>, %arg7: memref<1x128xf32, #tpu.memory_space<vmem>>, %arg8: memref<1x128xf32, #tpu.memory_space<vmem>>, %arg9: memref<128x256xbf16, #tpu.memory_space<vmem>>, %arg10: memref<1x256xf32, #tpu.memory_space<vmem>>, %arg11: memref<256x128xbf16, #tpu.memory_space<vmem>>, %arg12: memref<1x128xf32, #tpu.memory_space<vmem>>, %arg13: memref<1x128xf32, #tpu.memory_space<vmem>>, %arg14: memref<1x128xf32, #tpu.memory_space<vmem>>, %arg15: memref<1x8x128xf32, #tpu.memory_space<vmem>>) attributes {dimension_semantics = [#tpu.dimension_semantics<parallel>], iteration_bounds = array<i64: 2>, scalar_prefetch = 0 : i64, scratch_operands = 0 : i64, tpu.core_type = #tpu.core_type<tc>, window_params = [{transform_indices = @transform_0, window_bounds = array<i64: 1, 8, 128>}, {transform_indices = @transform_1, window_bounds = array<i64: 1, 1, 8>}, {pipeline_mode = #tpu.pipeline_mode<synchronous>, transform_indices = @transform_2, window_bounds = array<i64: 128, 128>}, {pipeline_mode = #tpu.pipeline_mode<synchronous>, transform_indices = @transform_3, window_bounds = array<i64: 128, 128>}, {pipeline_mode = #tpu.pipeline_mode<synchronous>, transform_indices = @transform_4, window_bounds = array<i64: 128, 128>}, {pipeline_mode = #tpu.pipeline_mode<synchronous>, transform_indices = @transform_5, window_bounds = array<i64: 128, 128>}, {pipeline_mode = #tpu.pipeline_mode<synchronous>, transform_indices = @transform_6, window_bounds = array<i64: 1, 128>}, {pipeline_mode = #tpu.pipeline_mode<synchronous>, transform_indices = @transform_7, window_bounds = array<i64: 1, 128>}, {pipeline_mode = #tpu.pipeline_mode<synchronous>, transform_indices = @transform_8, window_bounds = array<i64: 128, 256>}, {pipeline_mode = #tpu.pipeline_mode<synchronous>, transform_indices = @transform_9, window_bounds = array<i64: 1, 256>}, {pipeline_mode = #tpu.pipeline_mode<synchronous>, transform_indices = @transform_10, window_bounds = array<i64: 256, 128>}, {pipeline_mode = #tpu.pipeline_mode<synchronous>, transform_indices = @transform_11, window_bounds = array<i64: 1, 128>}, {pipeline_mode = #tpu.pipeline_mode<synchronous>, transform_indices = @transform_12, window_bounds = array<i64: 1, 128>}, {pipeline_mode = #tpu.pipeline_mode<synchronous>, transform_indices = @transform_13, window_bounds = array<i64: 1, 128>}, {transform_indices = @transform_14, window_bounds = array<i64: 1, 8, 128>}]} {
    %c0 = arith.constant 0 : index
    %c0_0 = arith.constant 0 : index
    %c0_1 = arith.constant 0 : index
    %0 = vector.load %arg1[%c0, %c0_0, %c0_1] : memref<1x8x128xf32, #tpu.memory_space<vmem>>, vector<1x8x128xf32>
    %1 = vector.shape_cast %0 : vector<1x8x128xf32> to vector<8x128xf32>
    %2 = arith.truncf %1 : vector<8x128xf32> to vector<8x128xbf16>
    %c0_2 = arith.constant 0 : index
    %c0_3 = arith.constant 0 : index
    %3 = vector.load %arg3[%c0_2, %c0_3] : memref<128x128xbf16, #tpu.memory_space<vmem>>, vector<128x128xbf16>
    %cst = arith.constant dense<0.000000e+00> : vector<8x128xf32>
    %4 = tpu.matmul %2, %3, %cst {dimension_numbers = #tpu.dot_dimension_numbers<[1], [0], [0], [1], [0, 0, 1, 1], [], []>} : vector<8x128xbf16>, vector<128x128xbf16>, vector<8x128xf32> -> vector<8x128xf32>
    %5 = arith.truncf %4 : vector<8x128xf32> to vector<8x128xbf16>
    %c0_4 = arith.constant 0 : index
    %c0_5 = arith.constant 0 : index
    %6 = vector.load %arg4[%c0_4, %c0_5] : memref<128x128xbf16, #tpu.memory_space<vmem>>, vector<128x128xbf16>
    %cst_6 = arith.constant dense<0.000000e+00> : vector<8x128xf32>
    %7 = tpu.matmul %2, %6, %cst_6 {dimension_numbers = #tpu.dot_dimension_numbers<[1], [0], [0], [1], [0, 0, 1, 1], [], []>} : vector<8x128xbf16>, vector<128x128xbf16>, vector<8x128xf32> -> vector<8x128xf32>
    %8 = arith.truncf %7 : vector<8x128xf32> to vector<8x128xbf16>
    %c0_7 = arith.constant 0 : index
    %c0_8 = arith.constant 0 : index
    %9 = vector.load %arg5[%c0_7, %c0_8] : memref<128x128xbf16, #tpu.memory_space<vmem>>, vector<128x128xbf16>
    %cst_9 = arith.constant dense<0.000000e+00> : vector<8x128xf32>
    %10 = tpu.matmul %2, %9, %cst_9 {dimension_numbers = #tpu.dot_dimension_numbers<[1], [0], [0], [1], [0, 0, 1, 1], [], []>} : vector<8x128xbf16>, vector<128x128xbf16>, vector<8x128xf32> -> vector<8x128xf32>
    %11 = arith.truncf %10 : vector<8x128xf32> to vector<8x128xbf16>
    %12 = vector.extract_strided_slice %5 {offsets = [0, 0], sizes = [8, 32], strides = [1, 1]} : vector<8x128xbf16> to vector<8x32xbf16>
    %13 = vector.extract_strided_slice %5 {offsets = [0, 32], sizes = [8, 32], strides = [1, 1]} : vector<8x128xbf16> to vector<8x32xbf16>
    %14 = vector.extract_strided_slice %5 {offsets = [0, 64], sizes = [8, 32], strides = [1, 1]} : vector<8x128xbf16> to vector<8x32xbf16>
    %15 = vector.extract_strided_slice %5 {offsets = [0, 96], sizes = [8, 32], strides = [1, 1]} : vector<8x128xbf16> to vector<8x32xbf16>
    %16 = tpu.concatenate %12, %13, %14, %15 in 0 : vector<8x32xbf16>, vector<8x32xbf16>, vector<8x32xbf16>, vector<8x32xbf16> -> vector<32x32xbf16>
    %17 = vector.shape_cast %16 : vector<32x32xbf16> to vector<4x8x32xbf16>
    %18 = vector.extract_strided_slice %8 {offsets = [0, 0], sizes = [8, 32], strides = [1, 1]} : vector<8x128xbf16> to vector<8x32xbf16>
    %19 = vector.extract_strided_slice %8 {offsets = [0, 32], sizes = [8, 32], strides = [1, 1]} : vector<8x128xbf16> to vector<8x32xbf16>
    %20 = vector.extract_strided_slice %8 {offsets = [0, 64], sizes = [8, 32], strides = [1, 1]} : vector<8x128xbf16> to vector<8x32xbf16>
    %21 = vector.extract_strided_slice %8 {offsets = [0, 96], sizes = [8, 32], strides = [1, 1]} : vector<8x128xbf16> to vector<8x32xbf16>
    %22 = tpu.concatenate %18, %19, %20, %21 in 0 : vector<8x32xbf16>, vector<8x32xbf16>, vector<8x32xbf16>, vector<8x32xbf16> -> vector<32x32xbf16>
    %23 = vector.shape_cast %22 : vector<32x32xbf16> to vector<4x8x32xbf16>
    %24 = vector.extract_strided_slice %11 {offsets = [0, 0], sizes = [8, 32], strides = [1, 1]} : vector<8x128xbf16> to vector<8x32xbf16>
    %25 = vector.extract_strided_slice %11 {offsets = [0, 32], sizes = [8, 32], strides = [1, 1]} : vector<8x128xbf16> to vector<8x32xbf16>
    %26 = vector.extract_strided_slice %11 {offsets = [0, 64], sizes = [8, 32], strides = [1, 1]} : vector<8x128xbf16> to vector<8x32xbf16>
    %27 = vector.extract_strided_slice %11 {offsets = [0, 96], sizes = [8, 32], strides = [1, 1]} : vector<8x128xbf16> to vector<8x32xbf16>
    %28 = tpu.concatenate %24, %25, %26, %27 in 0 : vector<8x32xbf16>, vector<8x32xbf16>, vector<8x32xbf16>, vector<8x32xbf16> -> vector<32x32xbf16>
    %29 = vector.shape_cast %28 : vector<32x32xbf16> to vector<4x8x32xbf16>
    "tpu.trace_start"() <{level = 10 : i32, message = "xqd,xkd->xqk"}> : () -> ()
    %cst_10 = arith.constant dense<0.000000e+00> : vector<4x8x8xf32>
    %30 = tpu.matmul %17, %23, %cst_10 {dimension_numbers = #tpu.dot_dimension_numbers<[2], [2], [1], [1], [0, 0, 0, 1, 1, 1], [0], [0]>} : vector<4x8x32xbf16>, vector<4x8x32xbf16>, vector<4x8x8xf32> -> vector<4x8x8xf32>
    "tpu.trace_stop"() : () -> ()
    %c0_11 = arith.constant 0 : index
    %c0_12 = arith.constant 0 : index
    %c0_13 = arith.constant 0 : index
    %31 = vector.load %arg2[%c0_11, %c0_12, %c0_13] : memref<1x1x8xf32, #tpu.memory_space<vmem>>, vector<1x1x8xf32>
    %32 = tpu.concatenate %31, %31, %31, %31 in 0 : vector<1x1x8xf32>, vector<1x1x8xf32>, vector<1x1x8xf32>, vector<1x1x8xf32> -> vector<4x1x8xf32>
    %33 = vector.broadcast %32 : vector<4x1x8xf32> to vector<4x8x8xf32>
    %34 = arith.addf %30, %33 : vector<4x8x8xf32>
    %cst_14 = arith.constant dense<0xFF800000> : vector<4x8xf32>
    %35 = vector.multi_reduction <maximumf>, %34, %cst_14 [2] : vector<4x8x8xf32> to vector<4x8xf32>
    %36 = vector.shape_cast %35 : vector<4x8xf32> to vector<4x8x1xf32>
    %37 = vector.broadcast %36 : vector<4x8x1xf32> to vector<4x8x8xf32>
    %38 = arith.subf %34, %37 : vector<4x8x8xf32>
    %39 = math.exp %38 : vector<4x8x8xf32>
    %cst_15 = arith.constant dense<0.000000e+00> : vector<4x8xf32>
    %40 = vector.multi_reduction <add>, %39, %cst_15 [2] : vector<4x8x8xf32> to vector<4x8xf32>
    %41 = vector.shape_cast %40 : vector<4x8xf32> to vector<4x8x1xf32>
    %42 = tpu.reciprocal %41 : vector<4x8x1xf32> -> vector<4x8x1xf32>
    %43 = vector.broadcast %42 : vector<4x8x1xf32> to vector<4x8x8xf32>
    %44 = arith.mulf %39, %43 : vector<4x8x8xf32>
    %45 = arith.truncf %44 : vector<4x8x8xf32> to vector<4x8x8xbf16>
    "tpu.trace_start"() <{level = 10 : i32, message = "xqk,xkd->xqd"}> : () -> ()
    %cst_16 = arith.constant dense<0.000000e+00> : vector<4x8x32xf32>
    %46 = tpu.matmul %45, %29, %cst_16 {dimension_numbers = #tpu.dot_dimension_numbers<[2], [1], [1], [2], [0, 0, 0, 1, 1, 2], [0], [0]>} : vector<4x8x8xbf16>, vector<4x8x32xbf16>, vector<4x8x32xf32> -> vector<4x8x32xf32>
    "tpu.trace_stop"() : () -> ()
    %47 = arith.truncf %46 : vector<4x8x32xf32> to vector<4x8x32xbf16>
    %48 = vector.extract_strided_slice %47 {offsets = [0, 0, 0], sizes = [1, 8, 32], strides = [1, 1, 1]} : vector<4x8x32xbf16> to vector<1x8x32xbf16>
    %49 = vector.shape_cast %48 : vector<1x8x32xbf16> to vector<8x32xbf16>
    %50 = vector.extract_strided_slice %47 {offsets = [1, 0, 0], sizes = [1, 8, 32], strides = [1, 1, 1]} : vector<4x8x32xbf16> to vector<1x8x32xbf16>
    %51 = vector.shape_cast %50 : vector<1x8x32xbf16> to vector<8x32xbf16>
    %52 = vector.extract_strided_slice %47 {offsets = [2, 0, 0], sizes = [1, 8, 32], strides = [1, 1, 1]} : vector<4x8x32xbf16> to vector<1x8x32xbf16>
    %53 = vector.shape_cast %52 : vector<1x8x32xbf16> to vector<8x32xbf16>
    %54 = vector.extract_strided_slice %47 {offsets = [3, 0, 0], sizes = [1, 8, 32], strides = [1, 1, 1]} : vector<4x8x32xbf16> to vector<1x8x32xbf16>
    %55 = vector.shape_cast %54 : vector<1x8x32xbf16> to vector<8x32xbf16>
    %56 = tpu.concatenate %49, %51, %53, %55 in 1 : vector<8x32xbf16>, vector<8x32xbf16>, vector<8x32xbf16>, vector<8x32xbf16> -> vector<8x128xbf16>
    %c0_17 = arith.constant 0 : index
    %c0_18 = arith.constant 0 : index
    %57 = vector.load %arg6[%c0_17, %c0_18] : memref<128x128xbf16, #tpu.memory_space<vmem>>, vector<128x128xbf16>
    %cst_19 = arith.constant dense<0.000000e+00> : vector<8x128xf32>
    %58 = tpu.matmul %56, %57, %cst_19 {dimension_numbers = #tpu.dot_dimension_numbers<[1], [0], [0], [1], [0, 0, 1, 1], [], []>} : vector<8x128xbf16>, vector<128x128xbf16>, vector<8x128xf32> -> vector<8x128xf32>
    %59 = arith.addf %1, %58 : vector<8x128xf32>
    %c0_20 = arith.constant 0 : index
    %c0_21 = arith.constant 0 : index
    %60 = vector.load %arg7[%c0_20, %c0_21] : memref<1x128xf32, #tpu.memory_space<vmem>>, vector<1x128xf32>
    %c0_22 = arith.constant 0 : index
    %c0_23 = arith.constant 0 : index
    %61 = vector.load %arg8[%c0_22, %c0_23] : memref<1x128xf32, #tpu.memory_space<vmem>>, vector<1x128xf32>
    %cst_24 = arith.constant dense<0.000000e+00> : vector<8xf32>
    %62 = vector.multi_reduction <add>, %59, %cst_24 [1] : vector<8x128xf32> to vector<8xf32>
    %63 = vector.shape_cast %62 : vector<8xf32> to vector<8x1xf32>
    %cst_25 = arith.constant 1.280000e+02 : f32
    %64 = vector.broadcast %cst_25 : f32 to vector<8x1xf32>
    %65 = arith.divf %63, %64 : vector<8x1xf32>
    %66 = vector.broadcast %65 : vector<8x1xf32> to vector<8x128xf32>
    %67 = arith.subf %59, %66 : vector<8x128xf32>
    %68 = arith.mulf %67, %67 : vector<8x128xf32>
    %cst_26 = arith.constant dense<0.000000e+00> : vector<8xf32>
    %69 = vector.multi_reduction <add>, %68, %cst_26 [1] : vector<8x128xf32> to vector<8xf32>
    %70 = vector.shape_cast %69 : vector<8xf32> to vector<8x1xf32>
    %cst_27 = arith.constant 1.280000e+02 : f32
    %71 = vector.broadcast %cst_27 : f32 to vector<8x1xf32>
    %72 = arith.divf %70, %71 : vector<8x1xf32>
    %cst_28 = arith.constant 9.99999996E-13 : f32
    %73 = vector.broadcast %cst_28 : f32 to vector<8x1xf32>
    %74 = arith.addf %72, %73 : vector<8x1xf32>
    %75 = math.rsqrt %74 : vector<8x1xf32>
    %76 = vector.broadcast %75 : vector<8x1xf32> to vector<8x128xf32>
    %77 = arith.mulf %67, %76 : vector<8x128xf32>
    %78 = vector.broadcast %60 : vector<1x128xf32> to vector<8x128xf32>
    %79 = arith.mulf %78, %77 : vector<8x128xf32>
    %80 = vector.broadcast %61 : vector<1x128xf32> to vector<8x128xf32>
    %81 = arith.addf %79, %80 : vector<8x128xf32>
    %82 = arith.truncf %81 : vector<8x128xf32> to vector<8x128xbf16>
    %c0_29 = arith.constant 0 : index
    %c0_30 = arith.constant 0 : index
    %83 = vector.load %arg9[%c0_29, %c0_30] : memref<128x256xbf16, #tpu.memory_space<vmem>>, vector<128x256xbf16>
    %cst_31 = arith.constant dense<0.000000e+00> : vector<8x256xf32>
    %84 = tpu.matmul %82, %83, %cst_31 {dimension_numbers = #tpu.dot_dimension_numbers<[1], [0], [0], [1], [0, 0, 1, 1], [], []>} : vector<8x128xbf16>, vector<128x256xbf16>, vector<8x256xf32> -> vector<8x256xf32>
    %c0_32 = arith.constant 0 : index
    %c0_33 = arith.constant 0 : index
    %85 = vector.load %arg10[%c0_32, %c0_33] : memref<1x256xf32, #tpu.memory_space<vmem>>, vector<1x256xf32>
    %86 = vector.broadcast %85 : vector<1x256xf32> to vector<8x256xf32>
    %87 = arith.addf %84, %86 : vector<8x256xf32>
    %cst_34 = arith.constant 0.000000e+00 : f32
    %88 = vector.broadcast %cst_34 : f32 to vector<8x256xf32>
    %89 = arith.maximumf %87, %88 : vector<8x256xf32>
    %90 = arith.truncf %89 : vector<8x256xf32> to vector<8x256xbf16>
    %c0_35 = arith.constant 0 : index
    %c0_36 = arith.constant 0 : index
    %91 = vector.load %arg11[%c0_35, %c0_36] : memref<256x128xbf16, #tpu.memory_space<vmem>>, vector<256x128xbf16>
    %cst_37 = arith.constant dense<0.000000e+00> : vector<8x128xf32>
    %92 = tpu.matmul %90, %91, %cst_37 {dimension_numbers = #tpu.dot_dimension_numbers<[1], [0], [0], [1], [0, 0, 1, 1], [], []>} : vector<8x256xbf16>, vector<256x128xbf16>, vector<8x128xf32> -> vector<8x128xf32>
    %c0_38 = arith.constant 0 : index
    %c0_39 = arith.constant 0 : index
    %93 = vector.load %arg12[%c0_38, %c0_39] : memref<1x128xf32, #tpu.memory_space<vmem>>, vector<1x128xf32>
    %94 = vector.broadcast %93 : vector<1x128xf32> to vector<8x128xf32>
    %95 = arith.addf %92, %94 : vector<8x128xf32>
    %96 = arith.addf %81, %95 : vector<8x128xf32>
    %c0_40 = arith.constant 0 : index
    %c0_41 = arith.constant 0 : index
    %97 = vector.load %arg13[%c0_40, %c0_41] : memref<1x128xf32, #tpu.memory_space<vmem>>, vector<1x128xf32>
    %c0_42 = arith.constant 0 : index
    %c0_43 = arith.constant 0 : index
    %98 = vector.load %arg14[%c0_42, %c0_43] : memref<1x128xf32, #tpu.memory_space<vmem>>, vector<1x128xf32>
    %cst_44 = arith.constant dense<0.000000e+00> : vector<8xf32>
    %99 = vector.multi_reduction <add>, %96, %cst_44 [1] : vector<8x128xf32> to vector<8xf32>
    %100 = vector.shape_cast %99 : vector<8xf32> to vector<8x1xf32>
    %cst_45 = arith.constant 1.280000e+02 : f32
    %101 = vector.broadcast %cst_45 : f32 to vector<8x1xf32>
    %102 = arith.divf %100, %101 : vector<8x1xf32>
    %103 = vector.broadcast %102 : vector<8x1xf32> to vector<8x128xf32>
    %104 = arith.subf %96, %103 : vector<8x128xf32>
    %105 = arith.mulf %104, %104 : vector<8x128xf32>
    %cst_46 = arith.constant dense<0.000000e+00> : vector<8xf32>
    %106 = vector.multi_reduction <add>, %105, %cst_46 [1] : vector<8x128xf32> to vector<8xf32>
    %107 = vector.shape_cast %106 : vector<8xf32> to vector<8x1xf32>
    %cst_47 = arith.constant 1.280000e+02 : f32
    %108 = vector.broadcast %cst_47 : f32 to vector<8x1xf32>
    %109 = arith.divf %107, %108 : vector<8x1xf32>
    %cst_48 = arith.constant 9.99999996E-13 : f32
    %110 = vector.broadcast %cst_48 : f32 to vector<8x1xf32>
    %111 = arith.addf %109, %110 : vector<8x1xf32>
    %112 = math.rsqrt %111 : vector<8x1xf32>
    %113 = vector.broadcast %112 : vector<8x1xf32> to vector<8x128xf32>
    %114 = arith.mulf %104, %113 : vector<8x128xf32>
    %115 = vector.broadcast %97 : vector<1x128xf32> to vector<8x128xf32>
    %116 = arith.mulf %115, %114 : vector<8x128xf32>
    %117 = vector.broadcast %98 : vector<1x128xf32> to vector<8x128xf32>
    %118 = arith.addf %116, %117 : vector<8x128xf32>
    %119 = vector.shape_cast %118 : vector<8x128xf32> to vector<1x8x128xf32>
    %c0_49 = arith.constant 0 : index
    %c0_50 = arith.constant 0 : index
    %c0_51 = arith.constant 0 : index
    %120 = vector.load %arg15[%c0_49, %c0_50, %c0_51] : memref<1x8x128xf32, #tpu.memory_space<vmem>>, vector<1x8x128xf32>
    tpu.vector_store %arg15[%c0_49, %c0_50, %c0_51], %119 {strides = array<i32>} : memref<1x8x128xf32, #tpu.memory_space<vmem>>, vector<1x8x128xf32>,
    return
  }
  func.func @transform_0(%arg0: i32) -> (i32, i32, i32) {
    %c0_i32 = arith.constant 0 : i32
    %c0_i32_0 = arith.constant 0 : i32
    %c0_i32_1 = arith.constant 0 : i32
    return %arg0, %c0_i32, %c0_i32_0 : i32, i32, i32
  }
  func.func @transform_1(%arg0: i32) -> (i32, i32, i32) {
    %c0_i32 = arith.constant 0 : i32
    %c0_i32_0 = arith.constant 0 : i32
    %c0_i32_1 = arith.constant 0 : i32
    return %arg0, %c0_i32, %c0_i32_0 : i32, i32, i32
  }
  func.func @transform_2(%arg0: i32) -> (i32, i32) {
    %c0_i32 = arith.constant 0 : i32
    %c0_i32_0 = arith.constant 0 : i32
    %c0_i32_1 = arith.constant 0 : i32
    return %c0_i32, %c0_i32_0 : i32, i32
  }
  func.func @transform_3(%arg0: i32) -> (i32, i32) {
    %c0_i32 = arith.constant 0 : i32
    %c0_i32_0 = arith.constant 0 : i32
    %c0_i32_1 = arith.constant 0 : i32
    return %c0_i32, %c0_i32_0 : i32, i32
  }
  func.func @transform_4(%arg0: i32) -> (i32, i32) {
    %c0_i32 = arith.constant 0 : i32
    %c0_i32_0 = arith.constant 0 : i32
    %c0_i32_1 = arith.constant 0 : i32
    return %c0_i32, %c0_i32_0 : i32, i32
  }
  func.func @transform_5(%arg0: i32) -> (i32, i32) {
    %c0_i32 = arith.constant 0 : i32
    %c0_i32_0 = arith.constant 0 : i32
    %c0_i32_1 = arith.constant 0 : i32
    return %c0_i32, %c0_i32_0 : i32, i32
  }
  func.func @transform_6(%arg0: i32) -> (i32, i32) {
    %c0_i32 = arith.constant 0 : i32
    %c0_i32_0 = arith.constant 0 : i32
    %c0_i32_1 = arith.constant 0 : i32
    return %c0_i32, %c0_i32_0 : i32, i32
  }
  func.func @transform_7(%arg0: i32) -> (i32, i32) {
    %c0_i32 = arith.constant 0 : i32
    %c0_i32_0 = arith.constant 0 : i32
    %c0_i32_1 = arith.constant 0 : i32
    return %c0_i32, %c0_i32_0 : i32, i32
  }
  func.func @transform_8(%arg0: i32) -> (i32, i32) {
    %c0_i32 = arith.constant 0 : i32
    %c0_i32_0 = arith.constant 0 : i32
    %c0_i32_1 = arith.constant 0 : i32
    return %c0_i32, %c0_i32_0 : i32, i32
  }
  func.func @transform_9(%arg0: i32) -> (i32, i32) {
    %c0_i32 = arith.constant 0 : i32
    %c0_i32_0 = arith.constant 0 : i32
    %c0_i32_1 = arith.constant 0 : i32
    return %c0_i32, %c0_i32_0 : i32, i32
  }
  func.func @transform_10(%arg0: i32) -> (i32, i32) {
    %c0_i32 = arith.constant 0 : i32
    %c0_i32_0 = arith.constant 0 : i32
    %c0_i32_1 = arith.constant 0 : i32
    return %c0_i32, %c0_i32_0 : i32, i32
  }
  func.func @transform_11(%arg0: i32) -> (i32, i32) {
    %c0_i32 = arith.constant 0 : i32
    %c0_i32_0 = arith.constant 0 : i32
    %c0_i32_1 = arith.constant 0 : i32
    return %c0_i32, %c0_i32_0 : i32, i32
  }
  func.func @transform_12(%arg0: i32) -> (i32, i32) {
    %c0_i32 = arith.constant 0 : i32
    %c0_i32_0 = arith.constant 0 : i32
    %c0_i32_1 = arith.constant 0 : i32
    return %c0_i32, %c0_i32_0 : i32, i32
  }
  func.func @transform_13(%arg0: i32) -> (i32, i32) {
    %c0_i32 = arith.constant 0 : i32
    %c0_i32_0 = arith.constant 0 : i32
    %c0_i32_1 = arith.constant 0 : i32
    return %c0_i32, %c0_i32_0 : i32, i32
  }
  func.func @transform_14(%arg0: i32) -> (i32, i32, i32) {
    %c0_i32 = arith.constant 0 : i32
    %c0_i32_0 = arith.constant 0 : i32
    %c0_i32_1 = arith.constant 0 : i32
    return %arg0, %c0_i32, %c0_i32_0 : i32, i32, i32
  }
}

</mosaic_0001>

<bundles_post_ra>
// kernel: encoder_forward.2
= control target key start
LH: loop header
LB: loop body
LE: loop exit
PB: predicated region body
PF: predicated region fallthrough
CT: control target
= control target key end

     0   :  { %s2685_s0 = inlined_call_operand.vmem [shape: f32[2,8,128], index: 0, kind: input, shape index: {}]   ;;  %s2686_s1 = inlined_call_operand.vmem [shape: f32[2,1,8], index: 1, kind: input, shape index: {}]   ;;  %s2687_s2 = inlined_call_operand.hbm [shape: bf16[128,128], index: 2, kind: input, shape index: {}]   ;;  %s2688_s3 = inlined_call_operand.hbm [shape: bf16[128,128], index: 3, kind: input, shape index: {}]   ;;  %s2689_s4 = inlined_call_operand.hbm [shape: bf16[128,128], index: 4, kind: input, shape index: {}]   ;;  %s2690_s5 = inlined_call_operand.hbm [shape: bf16[128,128], index: 5, kind: input, shape index: {}]   ;;  %s2691_s6 = inlined_call_operand.vmem [shape: f32[1,128], index: 6, kind: input, shape index: {}]   ;;  %s2692_s7 = inlined_call_operand.vmem [shape: f32[1,128], index: 7, kind: input, shape index: {}]   ;;  %s2693_s8 = inlined_call_operand.vmem [shape: bf16[128,256], index: 8, kind: input, shape index: {}]   ;;  %s2694_s9 = inlined_call_operand.vmem [shape: f32[1,256], index: 9, kind: input, shape index: {}]   ;;  %s2695_s10 = inlined_call_operand.hbm [shape: bf16[256,128], index: 10, kind: input, shape index: {}]   ;;  %s2696_s11 = inlined_call_operand.vmem [shape: f32[1,128], index: 11, kind: input, shape index: {}]   ;;  %s2697_s12 = inlined_call_operand.vmem [shape: f32[1,128], index: 12, kind: input, shape index: {}]   ;;  %s2698_s13 = inlined_call_operand.vmem [shape: f32[1,128], index: 13, kind: input, shape index: {}]   ;;  %s2699_s14 = inlined_call_operand.vmem [shape: f32[2,8,128], index: 14, kind: output, shape index: {}]  }
   0x1   :  { %2701 = sst [smem:[#allocation14_spill]] %s2687_s2 }
   0x2   :  { %2702 = sst [smem:[#allocation15_spill]] %s2688_s3 }
   0x3   :  { %2703 = sst [smem:[#allocation16_spill]] %s2690_s5 }
   0x4   :  { %19 = vsyncpa [#allocation3], 0 }
   0x5   :  { %20 = vsyncpa [#allocation5], 0 }
   0x6   :  { %21 = vsyncpa [#allocation8], 0  ;;  %s2406_s29 = smov 0  }
   0x7 LB: > { %2704 = sst [smem:[#allocation13_spill]] %s2318_s29  ;;  %s2412_s30 = sadd.s32 4294967295, %s2318_s29   ;;  %s2318_s29 = sphi %s2406_s29, %s27_s29  }
   0x8   : > { %p1712_p0 = scmp.ge.s32.totalorder %s2318_s29, 1  ;;  %p362_p1 = scmp.lt.s32.totalorder %s2318_s29, 3 }
   0x9   : > { %p2093_p2 = scmp.eq.s32.totalorder %s2412_s30, 0  ;;  %s2705_s3 = sld [smem:[#allocation15_spill]] }
   0xa   : > { %p2420_p3 = pnand %p1712_p0, %p362_p1  ;;  %s2707_s5 = sld [smem:[#allocation16_spill]] }
   0xb   : > { %s2320_s22 = smov [#allocation4]   ;;  %s2321_s25 = smov [#allocation7]  }
   0xc   : > { %p2077_p4 = pneg %p2420_p3  ;;  %s389_s23 = sshll.u32 %s2320_s22, 4  ;;  %s390_s23 = int_to_ptr.vmem [resolvable:$true] %s389_s23 }
   0xd   : > { %s417_s26 = sshll.u32 %s2321_s25, 4  ;;  %s2709_s2 = sld [smem:[#allocation14_spill]]  ;;  %s418_s26 = int_to_ptr.vmem [resolvable:$true] %s417_s26 }
   0xe   : > { %p2431_p5 = pnand %p2093_p2, %p2077_p4  ;;  %s2322_s16 = smov 64  }
   0xf   : > { %s387_s17 = sshll.u32 %s2705_s3, 4  ;;  %s2323_s19 = smov 4   ;;  %s388_s17 = int_to_ptr.hbm [resolvable:$true] %s387_s17 }
  0x10   : > { %s415_s21 = sshll.u32 %s2707_s5, 4  ;;  %s2324_s20 = smov [#allocation2]   ;;  %s416_s21 = int_to_ptr.hbm [resolvable:$true] %s415_s21 }
  0x11   : > { %2083 = dma.hbm_to_vmem [thread:$0]  (!%p2431_p5), %s388_s17, 1024, %s390_s23, [#allocation5], %s2322_s16, %s2322_s16, %s2323_s19  }
  0x12   : > { %2089 = dma.hbm_to_vmem [thread:$0]  (!%p2431_p5), %s416_s21, 1024, %s418_s26, [#allocation8], %s2322_s16, %s2322_s16, %s2323_s19  }
  0x13   : > { %s373_s15 = sshll.u32 %s2709_s2, 4  ;;  %s375_s22 = sshll.u32 %s2324_s20, 4  ;;  %s374_s15 = int_to_ptr.hbm [resolvable:$true] %s373_s15  ;;  %s376_s22 = int_to_ptr.vmem [resolvable:$true] %s375_s22 }
  0x14   : > { %s401_s25 = sshll.u32 %s2689_s4, 4  ;;  %s441_s2 = sshll.u32 %s2695_s10, 4  ;;  %s402_s25 = int_to_ptr.hbm [resolvable:$true] %s401_s25  ;;  %s442_s2 = int_to_ptr.hbm [resolvable:$true] %s441_s2 }
  0x15   : > { %2080 = dma.hbm_to_vmem [thread:$0]  (!%p2431_p5), %s374_s15, 1024, %s376_s22, [#allocation3], %s2322_s16, %s2322_s16, %s2323_s19  }
  0x16   : > { %s2325_s29 = smov [#allocation6]   ;;  %s2326_s21 = smov [#allocation9]  }
  0x17   : > { %s403_s17 = sshll.u32 %s2325_s29, 4  ;;  %s443_s23 = sshll.u32 %s2326_s21, 4  ;;  %s404_s17 = int_to_ptr.vmem [resolvable:$true] %s403_s17  ;;  %s444_s23 = int_to_ptr.vmem [resolvable:$true] %s443_s23 }
  0x18   : > { %2086 = dma.hbm_to_vmem [thread:$0]  (!%p2431_p5), %s402_s25, 1024, %s404_s17, [#allocation5], %s2322_s16, %s2322_s16, %s2323_s19  }
  0x19   : > { %2092 = dma.hbm_to_vmem [thread:$0]  (!%p2431_p5), %s442_s2, 2048, %s444_s23, [#allocation8], %s2322_s16, %s2322_s16, %s2323_s19  }
  0x1a   : > { %481 = sbr.rel (%p2420_p3) target bundleno = 1973 (0x7b5), region = 76 }
  0x1f   : > { %2305 = dma.done.wait (%p2093_p2), [#allocation3], 1024  }
  0x20   : > { %2307 = vsyncadd (%p2093_p2), [#allocation3], 4294966272 }
  0x21   : > { %2309 = dma.done.wait (%p2093_p2), [#allocation5], 2048  }
  0x22   : > { %2311 = vsyncadd (%p2093_p2), [#allocation5], 4294965248 }
  0x23   : > { %2313 = dma.done.wait (%p2093_p2), [#allocation8], 3072  }
  0x24   : > { %2315 = vsyncadd (%p2093_p2), [#allocation8], 4294964224  ;;  %v2000_v0 = vld [vmem:[#allocation2 + $0x38] sm:$0xff]  ;;  %v1999_v2 = vld [vmem:[#allocation2 + $0x30] sm:$0xff]  ;;  %p549_p6 = scmp.lt.s32.totalorder %s2412_s30, 1  ;;  %s2327_s18 = smov 64  }
  0x25   : > { %v2008_v1 = vld [vmem:[#allocation4 + $0x38] sm:$0xff]  ;;  %627 = vmatpush.bf16.msra.mxu0 %v2000_v0  ;;  %v2007_v3 = vld [vmem:[#allocation4 + $0x30] sm:$0xff]  ;;  %v1998_v4 = vld [vmem:[#allocation2 + $0x28] sm:$0xff]  ;;  %s2328_s24 = smov 96   ;;  %s2329_s26 = smov 32   ;;  %vm806_vm0 = vcmask 1043456  }
  0x26   : > { %705 = vmatpush.bf16.msra.mxu1 %v2008_v1  ;;  %v2006_v5 = vld [vmem:[#allocation4 + $0x28] sm:$0xff]  ;;  %v1997_v6 = vld [vmem:[#allocation2 + $0x20] sm:$0xff]  ;;  %v1996_v8 = vld [vmem:[#allocation2 + $0x18] sm:$0xff]  ;;  %s2712_s30 = smov (!%p549_p6, %s2412_s30), 1  ;;  %vm877_vm1 = vcmask 261120   ;;  %vm954_vm2 = vcmask 64512  }
  0x27   : > { %v2005_v7 = vld [vmem:[#allocation4 + $0x20] sm:$0xff]  ;;  %v2004_v9 = vld [vmem:[#allocation4 + $0x18] sm:$0xff]  ;;  %v1995_v10 = vld [vmem:[#allocation2 + $0x10] sm:$0xff]  ;;  %s1725_s2 = sshll.u32 %s2712_s30, 3  ;;  %s555_s19 = scalar_lea.vmem %s2686_s1, %s2712_s30 }
  0x28   : > { %v2003_v11 = vld [vmem:[#allocation4 + $0x10] sm:$0xff]  ;;  %v1994_v12 = vld [vmem:[#allocation2 + $0x8] sm:$0xff]  ;;  %s552_s29 = scalar_lea.vmem %s2685_s0, %s1725_s2  ;;  %v1993_v14 = vld [vmem:[#allocation2] sm:$0xff] }
  0x29   : > { %628 = vmatpush.bf16.msra.mxu0 %v1999_v2  ;;  %v2002_v13 = vld [vmem:[#allocation4 + $0x8] sm:$0xff]  ;;  %v2001_v15 = vld [vmem:[#allocation4] sm:$0xff]  ;;  %v2016_v28 = vld [vmem:[#allocation6 + $0x38] sm:$0xff] }
  0x2a   : > { %706 = vmatpush.bf16.msra.mxu1 %v2007_v3  ;;  %v2478_v16 = vld [vmem:[%s552_s29] sm:$0xff]  ;;  %783 = vmatpush.bf16.msra.mxu2 %v2016_v28  ;;  %v2015_v29 = vld [vmem:[#allocation6 + $0x30] sm:$0xff]  ;;  %v2014_v30 = vld [vmem:[#allocation6 + $0x28] sm:$0xff] }
  0x2b   : > { %v2482_v17 = vpack.c.bf16 %v2478_v16, %v2478_v16  ;;  %v2013_v31 = vld [vmem:[#allocation6 + $0x20] sm:$0xff]  ;;  %v2012_v35 = vld [vmem:[#allocation6 + $0x18] sm:$0xff]  ;;  %v2011_v41 = vld [vmem:[#allocation6 + $0x10] sm:$0xff] }
  0x2c   : > { %v2010_v46 = vld [vmem:[#allocation6 + $0x8] sm:$0xff]  ;;  %v2009_v59 = vld [vmem:[#allocation6] sm:$0xff] }
  0x2d   : > { %629 = vmatpush.bf16.msra.mxu0 %v1998_v4  ;;  %v2122_v2 = vld [vmem:[%s555_s19] ss:$0 sm:$0xff] }
  0x2e   : > { %707 = vmatpush.bf16.msra.mxu1 %v2006_v5  ;;  %784 = vmatpush.bf16.msra.mxu2 %v2015_v29 }
  0x31   : > { %630 = vmatpush.bf16.msra.mxu0 %v1997_v6 }
  0x32   : > { %708 = vmatpush.bf16.msra.mxu1 %v2005_v7  ;;  %785 = vmatpush.bf16.msra.mxu2 %v2014_v30 }
  0x35   : > { %631 = vmatpush.bf16.msra.mxu0 %v1996_v8 }
  0x36   : > { %709 = vmatpush.bf16.msra.mxu1 %v2004_v9  ;;  %786 = vmatpush.bf16.msra.mxu2 %v2013_v31 }
  0x39   : > { %632 = vmatpush.bf16.msra.mxu0 %v1995_v10 }
  0x3a   : > { %710 = vmatpush.bf16.msra.mxu1 %v2003_v11  ;;  %787 = vmatpush.bf16.msra.mxu2 %v2012_v35 }
  0x3d   : > { %633 = vmatpush.bf16.msra.mxu0 %v1994_v12 }
  0x3e   : > { %711 = vmatpush.bf16.msra.mxu1 %v2002_v13  ;;  %788 = vmatpush.bf16.msra.mxu2 %v2011_v41 }
  0x41   : > { %634 = vmatpush.bf16.msra.mxu0 %v1993_v14 }
  0x42   : > { %712 = vmatpush.bf16.msra.mxu1 %v2001_v15  ;;  %789 = vmatpush.bf16.msra.mxu2 %v2010_v46 }
  0x44   : > { %635 = vmatmul.bf16.vlgmr.msra.gmra.mxu0 %v2482_v17 }
  0x45   : > { %713 = vmatmul.bf16.vlgmr.msra.gmra.mxu1 %v2482_v17 }
  0x46   : > { %790 = vmatpush.bf16.msra.mxu2 %v2009_v59 }
  0x49   : > { %791 = vmatmul.bf16.vlgmr.msra.gmra.mxu2 %v2482_v17 }
  0xc1   : > { %v636_v18 = vpop.f32.mrf.mxu0 }
  0xc2   : > { %v714_v19 = vpop.f32.mrf.mxu1  ;;  %v640_v20 = vpack.c.bf16 %v636_v18, %v636_v18 }
  0xc3   : > { %v718_v21 = vpack.c.bf16 %v714_v19, %v714_v19 }
  0xc4   : > { %v798_v22 = vunpack.c.l.b16 %v640_v20 }
  0xc5   : > { %v824_v23 = vunpack.c.l.b16 %v718_v21 }
  0xc6   : > { %v799_v24 = vpack.c.b16 %v798_v22, %v798_v22 }
  0xc7   : > { %v825_v25 = vpack.c.b16 %v824_v23, %v824_v23 }
  0xc8   : > { %802 = vrot.lane.b32.xlu2 %v799_v24, %s2327_s18 }
  0xc9   : > { %828 = vrot.lane.b32.xlu1 %v825_v25, %s2327_s18  ;;  %826 = vrot.lane.b32.xlu0 %v825_v25, %s2328_s24  ;;  %v638_v26 = vpop.f32.mrf.mxu0 }
  0xca   : > { %v716_v27 = vpop.f32.mrf.mxu1 }
  0xcc   : > { %v792_v7 = vpop.f32.mrf.mxu2 }
  0xcd   : > { %v796_v18 = vpack.c.bf16 %v792_v7, %v792_v7 }
  0xd0   : > { %804 = vrot.lane.b32.xlu2 %v799_v24, %s2329_s26 }
  0xd1   : > { %830 = vrot.lane.b32.xlu1 %v825_v25, %s2329_s26  ;;  %800 = vrot.lane.b32.xlu0 %v799_v24, %s2328_s24 }
  0xd4   : > { %v794_v10 = vpop.f32.mrf.mxu2 }
 0x122   : > { %v803_v32 = vpop.permute.xlu2 %802 }
 0x12a   : > { %v805_v49 = vpop.permute.xlu2 %804 }
 0x12b   : > { %v812_v56 = vsel %vm806_vm0, %v803_v32, %v805_v49 }
 0x12c   : > { %v818_v60 = vunpack.c.h.b16 %v812_v56  ;;  %v817_v0 = vunpack.c.l.b16 %v812_v56 }
 0x12e   : > { %v822_v61 = vpack.c.b16 %v818_v60, %v818_v60  ;;  %v821_v1 = vpack.c.b16 %v817_v0, %v817_v0 }
 0x13b   : > { %v829_v33 = vpop.permute.xlu1 %828  ;;  %v827_v34 = vpop.permute.xlu0 %826 }
 0x13c   : > { %v834_v36 = vsel %vm806_vm0, %v718_v21, %v827_v34 }
 0x13d   : > { %v841_v37 = vunpack.c.h.b16 %v834_v36  ;;  %v840_v38 = vunpack.c.l.b16 %v834_v36 }
 0x13f   : > { %v844_v39 = vpack.c.b16 %v840_v38, %v840_v38  ;;  %v845_v40 = vpack.c.b16 %v841_v37, %v841_v37 }
 0x141   : > { %v882_v42 = vsel %vm877_vm1, %v844_v39, 0  ;;  %v901_v43 = vsel %vm877_vm1, %v845_v40, 0 }
 0x142   : > { %891 = vmatpush.bf16.xpose.msra.mxu3 %v882_v42 }
 0x143   : > { %v831_v44 = vpop.permute.xlu1 %830  ;;  %v801_v45 = vpop.permute.xlu0 %800 }
 0x144   : > { %v837_v47 = vsel %vm806_vm0, %v829_v33, %v831_v44  ;;  %v809_v48 = vsel %vm806_vm0, %v640_v20, %v801_v45  ;;  %v849_v20 = vunpack.c.l.b16 %v796_v18 }
 0x145   : > { %v842_v50 = vunpack.c.l.b16 %v837_v47  ;;  %v843_v51 = vunpack.c.h.b16 %v837_v47  ;;  %v815_v52 = vunpack.c.l.b16 %v809_v48  ;;  %v816_v62 = vunpack.c.h.b16 %v809_v48 }
 0x146   : > { %v850_v23 = vpack.c.b16 %v849_v20, %v849_v20 }
 0x147   : > { %v846_v53 = vpack.c.b16 %v842_v50, %v842_v50  ;;  %v819_v54 = vpack.c.b16 %v815_v52, %v815_v52  ;;  %v847_v55 = vpack.c.b16 %v843_v51, %v843_v51  ;;  %v820_v63 = vpack.c.b16 %v816_v62, %v816_v62 }
 0x149   : > { %1823 = vmatmul.msk.bf16.vlgmr.msra.gmra.mxu3 %vm877_vm1, %v819_v54  ;;  %v920_v57 = vsel %vm877_vm1, %v846_v53, 0  ;;  %v939_v58 = vsel %vm877_vm1, %v847_v55, 0 }
 0x14a   : > { %910 = vmatpush.bf16.xpose.msrb.mxu3 %v901_v43  ;;  %948 = vmatpush.bf16.xpose.msrb.mxu0 %v939_v58 }
 0x151   : > { %1826 = vmatmul.msk.bf16.vlgmr.msrb.gmra.mxu0 %vm877_vm1, %v822_v61 }
 0x152   : > { %929 = vmatpush.bf16.xpose.msra.mxu3 %v920_v57 }
 0x159   : > { %1824 = vmatmul.msk.bf16.vlgmr.msrb.gmra.mxu3 %vm877_vm1, %v820_v63 }
 0x169   : > { %1825 = vmatmul.msk.bf16.vlgmr.msra.gmra.mxu3 %vm877_vm1, %v821_v1 }
 0x1cc   : > { %v893_v3 = vpop.f32.mrf.mxu3 }
 0x1cd   : > { %v894_v4 = vadd.f32 %v2122_v2, %v893_v3 }
 0x1ce   : > { %v950_v5 = vpop.f32.mrf.mxu0 }
 0x1cf   : > { %v955_v6 = vsel %vm954_vm2, %v894_v4, -inf  ;;  %v951_v21 = vadd.f32 %v2122_v2, %v950_v5 }
 0x1d0   : > { %956 = vmax.xlane.f32.xlu0 %v955_v6 }
 0x1d1   : > { %v964_v24 = vsel %vm954_vm2, %v951_v21, -inf }
 0x1d4   : > { %v895_v8 = vpop.f32.mrf.mxu3 }
 0x1d6   : > { %v952_v9 = vpop.f32.mrf.mxu0 }
 0x1dc   : > { %v912_v11 = vpop.f32.mrf.mxu3 }
 0x1dd   : > { %v913_v12 = vadd.f32 %v2122_v2, %v912_v11 }
 0x1df   : > { %v958_v13 = vsel %vm954_vm2, %v913_v12, -inf }
 0x1e0   : > { %959 = vmax.xlane.f32.xlu1 %v958_v13 }
 0x1e4   : > { %v914_v14 = vpop.f32.mrf.mxu3 }
 0x1ec   : > { %v931_v15 = vpop.f32.mrf.mxu3 }
 0x1ed   : > { %v932_v17 = vadd.f32 %v2122_v2, %v931_v15 }
 0x1ef   : > { %v961_v19 = vsel %vm954_vm2, %v932_v17, -inf }
 0x1f0   : > { %962 = vmax.xlane.f32.xlu2 %v961_v19 }
 0x1f4   : > { %v933_v22 = vpop.f32.mrf.mxu3 }
 0x1f8   : > { %965 = vmax.xlane.f32.xlu2 %v964_v24 }
 0x1f9   : > { %851 = vrot.lane.b32.xlu1 %v850_v23, %s2328_s24 }
 0x243   : > { %v957_v25 = vpop.xlane.xlu0 %956 }
 0x244   : > { %v967_v26 = vsub.f32 %v894_v4, %v957_v25 }
 0x246   : > { %v971_v27 = vmul.f32 1.442695, %v967_v26 }
 0x248   : > { %2128 = vpow2.f32 %v971_v27 }
 0x24e   : > { %v2129_v28 = vpop.eup %2128 }
 0x24f   : > { %v979_v29 = vsel %vm954_vm2, %v2129_v28, 0.0 }
 0x250   : > { %980 = vadd.xlane.f32.xlu0 %v979_v29 }
 0x253   : > { %v960_v30 = vpop.xlane.xlu1 %959 }
 0x254   : > { %v968_v41 = vsub.f32 %v913_v12, %v960_v30 }
 0x256   : > { %v973_v48 = vmul.f32 1.442695, %v968_v41 }
 0x263   : > { %v963_v31 = vpop.xlane.xlu2 %962 }
 0x264   : > { %v969_v32 = vsub.f32 %v932_v17, %v963_v31 }
 0x266   : > { %v975_v33 = vmul.f32 1.442695, %v969_v32 }
 0x268   : > { %2130 = vpow2.f32 %v975_v33 }
 0x26b   : > { %v852_v34 = vpop.permute.xlu1 %851  ;;  %v966_v35 = vpop.xlane.xlu2 %965 }
 0x26c   : > { %v859_v36 = vsel %vm806_vm0, %v796_v18, %v852_v34  ;;  %v970_v37 = vsub.f32 %v951_v21, %v966_v35 }
 0x26d   : > { %v865_v38 = vunpack.c.l.b16 %v859_v36  ;;  %v866_v39 = vunpack.c.h.b16 %v859_v36 }
 0x26e   : > { %v2521_v40 = vpop.eup %2130  ;;  %v977_v42 = vmul.f32 1.442695, %v970_v37 }
 0x26f   : > { %v870_v43 = vpack.c.b16 %v866_v39, %v866_v39  ;;  %v985_v44 = vsel %vm954_vm2, %v2521_v40, 0.0  ;;  %v869_v45 = vpack.c.b16 %v865_v38, %v865_v38 }
 0x270   : > { %2132 = vpow2.f32 %v977_v42  ;;  %986 = vadd.xlane.f32.xlu0 %v985_v44 }
 0x271   : > { %v1059_v46 = vsel %vm806_vm0, %v869_v45, 0  ;;  %v1078_v47 = vsel %vm806_vm0, %v870_v43, 0  ;;  %2134 = vpow2.f32 %v973_v48 }
 0x272   : > { %1068 = vmatpush.bf16.msrb.mxu2 %v1059_v46 }
 0x276   : > { %1087 = vmatpush.bf16.msra.mxu2 %v1078_v47  ;;  %v2527_v49 = vpop.eup %2132 }
 0x277   : > { %v988_v50 = vsel %vm954_vm2, %v2527_v49, 0.0  ;;  %v2531_v51 = vpop.eup %2134 }
 0x278   : > { %989 = vadd.xlane.f32.xlu2 %v988_v50  ;;  %v982_v52 = vsel %vm954_vm2, %v2531_v51, 0.0 }
 0x280   : > { %983 = vadd.xlane.f32.xlu2 %v982_v52 }
 0x284   : > { %853 = vrot.lane.b32.xlu0 %v850_v23, %s2327_s18 }
 0x298   : > { %855 = vrot.lane.b32.xlu2 %v850_v23, %s2329_s26 }
 0x2c3   : > { %v981_v53 = vpop.xlane.xlu0 %980 }
 0x2c4   : > { %2136 = vrcp.f32 %v981_v53  ;;  %v1002_v57 = vand.u32 2147483648, %v981_v53  ;;  %v1000_v59 = vand.u32 2147483647, %v981_v53  ;;  %vm996_vm4 = vweird.f32 %v981_v53 }
 0x2c6   : > { %v1003_v61 = vor.u32 1.1754944e-38, %v1002_v57  ;;  %vm1001_vm6 = vcmp.eq.f32.partialorder %v1000_v59, 8.507059e+37 }
 0x2ca   : > { %v2137_v54 = vpop.eup %2136 }
 0x2cb   : > { %v992_v55 = vmul.f32 %v2137_v54, %v981_v53  ;;  %vm997_vm3 = vweird.f32 %v2137_v54 }
 0x2cc   : > { %vm998_vm5 = vmor %vm996_vm4, %vm997_vm3 }
 0x2cd   : > { %v993_v56 = vsub.f32 1.0, %v992_v55  ;;  %v2023_v55 = vld [vmem:[#allocation7 + $0x30] sm:$0xff] }
 0x2cf   : > { %v994_v58 = vmul.f32 %v2137_v54, %v993_v56  ;;  %v2022_v56 = vld [vmem:[#allocation7 + $0x28] sm:$0xff] }
 0x2d1   : > { %v995_v60 = vadd.f32 %v2137_v54, %v994_v58 }
 0x2d3   : > { %v999_v62 = vsel %vm998_vm5, %v2137_v54, %v995_v60  ;;  %v2024_v54 = vld [vmem:[#allocation7 + $0x38] sm:$0xff] }
 0x2d4   : > { %v1004_v63 = vsel %vm1001_vm6, %v1003_v61, %v999_v62  ;;  %1224 = vmatpush.bf16.msrb.mxu1 %v2024_v54  ;;  %v2033_v54 = vld [vmem:[%s2693_s8 + $0x44] sm:$0xf] }
 0x2d5   : > { %v1047_v0 = vmul.f32 %v2129_v28, %v1004_v63 }
 0x2d7   : > { %v1051_v1 = vpack.c.bf16 %v1047_v0, %v1047_v0 }
 0x2d8   : > { %1225 = vmatpush.bf16.msrb.mxu1 %v2023_v55 }
 0x2d9   : > { %1827 = vmatmul.msk.bf16.vlgmr.msrb.gmra.mxu2 %vm954_vm2, %v1051_v1 }
 0x2dc   : > { %1226 = vmatpush.bf16.msrb.mxu1 %v2022_v56  ;;  %v1899_v56 = vld [vmem:[%s2693_s8 + $0x48] sm:$0xf0] }
 0x2e3   : > { %v987_v2 = vpop.xlane.xlu0 %986 }
 0x2e4   : > { %2138 = vrcp.f32 %v987_v2  ;;  %v1030_v12 = vand.u32 2147483648, %v987_v2  ;;  %vm1024_vm8 = vweird.f32 %v987_v2  ;;  %v1028_v14 = vand.u32 2147483647, %v987_v2 }
 0x2e6   : > { %v1031_v20 = vor.u32 1.1754944e-38, %v1030_v12  ;;  %vm1029_vm12 = vcmp.eq.f32.partialorder %v1028_v14, 8.507059e+37 }
 0x2ea   : > { %v2139_v3 = vpop.eup %2138 }
 0x2eb   : > { %v1020_v4 = vmul.f32 %v2139_v3, %v987_v2  ;;  %v990_v5 = vpop.xlane.xlu2 %989  ;;  %vm1025_vm7 = vweird.f32 %v2139_v3 }
 0x2ec   : > { %2140 = vrcp.f32 %v990_v5  ;;  %v1044_v15 = vand.u32 2147483648, %v990_v5  ;;  %vm1026_vm9 = vmor %vm1024_vm8, %vm1025_vm7  ;;  %v1042_v18 = vand.u32 2147483647, %v990_v5  ;;  %vm1038_vm11 = vweird.f32 %v990_v5 }
 0x2ed   : > { %v1021_v6 = vsub.f32 1.0, %v1020_v4 }
 0x2ee   : > { %v1045_v23 = vor.u32 1.1754944e-38, %v1044_v15  ;;  %vm1043_vm14 = vcmp.eq.f32.partialorder %v1042_v18, 8.507059e+37 }
 0x2ef   : > { %v1022_v7 = vmul.f32 %v2139_v3, %v1021_v6 }
 0x2f1   : > { %v1023_v11 = vadd.f32 %v2139_v3, %v1022_v7  ;;  %v2021_v7 = vld [vmem:[#allocation7 + $0x20] sm:$0xff] }
 0x2f2   : > { %v2141_v8 = vpop.eup %2140  ;;  %1227 = vmatpush.bf16.msrb.mxu1 %v2021_v7  ;;  %v2027_v7 = vld [vmem:[%s2693_s8 + $0x14] sm:$0xf] }
 0x2f3   : > { %v1034_v9 = vmul.f32 %v2141_v8, %v990_v5  ;;  %v984_v10 = vpop.xlane.xlu2 %983  ;;  %vm1039_vm10 = vweird.f32 %v2141_v8  ;;  %v1027_v19 = vsel %vm1026_vm9, %v2139_v3, %v1023_v11  ;;  %v2017_v11 = vld [vmem:[#allocation7] sm:$0xff] }
 0x2f4   : > { %2142 = vrcp.f32 %v984_v10  ;;  %vm1040_vm13 = vmor %vm1038_vm11, %vm1039_vm10  ;;  %v1032_v24 = vsel %vm1029_vm12, %v1031_v20, %v1027_v19  ;;  %v1014_v35 = vand.u32 2147483647, %v984_v10  ;;  %v1016_v36 = vand.u32 2147483648, %v984_v10 }
 0x2f5   : > { %v1035_v13 = vsub.f32 1.0, %v1034_v9  ;;  %v1049_v34 = vmul.f32 %v2521_v40, %v1032_v24  ;;  %vm1010_vm3 = vweird.f32 %v984_v10  ;;  %v2019_v9 = vld [vmem:[#allocation7 + $0x10] sm:$0xff] }
 0x2f6   : > { %v854_v27 = vpop.permute.xlu0 %853  ;;  %v1017_v45 = vor.u32 1.1754944e-38, %v1016_v36  ;;  %vm1015_vm5 = vcmp.eq.f32.partialorder %v1014_v35, 8.507059e+37  ;;  %v1921_v24 = vld [vmem:[%s2693_s8 + $0x70] sm:$0xf] }
 0x2f7   : > { %v1036_v17 = vmul.f32 %v2141_v8, %v1035_v13  ;;  %v1053_v40 = vpack.c.bf16 %v1049_v34, %v1049_v34 }
 0x2f9   : > { %v1037_v21 = vadd.f32 %v2141_v8, %v1036_v17 }
 0x2fa   : > { %v2143_v22 = vpop.eup %2142 }
 0x2fb   : > { %v1041_v25 = vsel %vm1040_vm13, %v2141_v8, %v1037_v21  ;;  %v1006_v26 = vmul.f32 %v2143_v22, %v984_v10  ;;  %v856_v28 = vpop.permute.xlu2 %855  ;;  %vm1011_vm15 = vweird.f32 %v2143_v22  ;;  %v2020_v8 = vld [vmem:[#allocation7 + $0x18] sm:$0xff]  ;;  %v2018_v10 = vld [vmem:[#allocation7 + $0x8] sm:$0xff] }
 0x2fc   : > { %v1046_v29 = vsel %vm1043_vm14, %v1045_v23, %v1041_v25  ;;  %v862_v30 = vsel %vm806_vm0, %v854_v27, %v856_v28  ;;  %vm1012_vm4 = vmor %vm1010_vm3, %vm1011_vm15  ;;  %1228 = vmatpush.bf16.msrb.mxu1 %v2020_v8  ;;  %v2330_v23 = vmov 128.0   ;;  %v2040_v25 = vld [vmem:[%s2693_s8 + $0x74] sm:$0xf0] }
 0x2fd   : > { %v1007_v31 = vsub.f32 1.0, %v1006_v26  ;;  %v867_v32 = vunpack.c.l.b16 %v862_v30  ;;  %v868_v33 = vunpack.c.h.b16 %v862_v30  ;;  %v1050_v37 = vmul.f32 %v2527_v49, %v1046_v29  ;;  %v2039_v26 = vld [vmem:[%s2693_s8 + $0x74] sm:$0xf] }
 0x2fe   : > { %2144 = vrcp.f32 %v2330_v23  ;;  %v1922_v27 = vor.u32 %v2040_v25, %v1921_v24  ;;  %v2055_v23 = vld [vmem:[#allocation9 + $0x70] sm:$0xff]  ;;  %v2046_v25 = vld [vmem:[#allocation9 + $0x28] sm:$0xff] }
 0x2ff   : > { %v1008_v38 = vmul.f32 %v2143_v22, %v1007_v31  ;;  %v871_v39 = vpack.c.b16 %v867_v32, %v867_v32  ;;  %v872_v41 = vpack.c.b16 %v868_v33, %v868_v33  ;;  %v1054_v47 = vpack.c.bf16 %v1050_v37, %v1050_v37 }
 0x300   : > { %1229 = vmatpush.bf16.msrb.mxu1 %v2019_v9  ;;  %1378 = vmatpush.bf16.msrb.mxu2 %v1922_v27  ;;  %v1875_v9 = vld [vmem:[%s2693_s8 + $0x18] sm:$0xf0]  ;;  %v2045_v27 = vld [vmem:[#allocation9 + $0x20] sm:$0xff] }
 0x301   : > { %v1009_v42 = vadd.f32 %v2143_v22, %v1008_v38  ;;  %v1097_v43 = vsel %vm806_vm0, %v871_v39, 0  ;;  %v1116_v44 = vsel %vm806_vm0, %v872_v41, 0  ;;  %vm1153_vm0 = vcmask 523264   ;;  %v1913_v39 = vld [vmem:[%s2693_s8 + $0x60] sm:$0xf] }
 0x302   : > { %1106 = vmatpush.bf16.msrb.mxu3 %v1097_v43  ;;  %1125 = vmatpush.bf16.msra.mxu0 %v1116_v44  ;;  %v2038_v41 = vld [vmem:[%s2693_s8 + $0x64] sm:$0xf0]  ;;  %v1915_v44 = vld [vmem:[%s2693_s8 + $0x68] sm:$0xf0] }
 0x303   : > { %v1013_v46 = vsel %vm1012_vm4, %v2143_v22, %v1009_v42  ;;  %v2037_v42 = vld [vmem:[%s2693_s8 + $0x64] sm:$0xf]  ;;  %v1914_v43 = vor.u32 %v2038_v41, %v1913_v39  ;;  %v2123_v41 = vld [vmem:[%s2691_s6] ss:$0 sm:$0xff] }
 0x304   : > { %v1018_v48 = vsel %vm1015_vm5, %v1017_v45, %v1013_v46  ;;  %1230 = vmatpush.bf16.msrb.mxu1 %v2018_v10  ;;  %v2145_v29 = vpop.eup %2144  ;;  %v1918_v45 = vor.u32 %v2037_v42, %v1915_v44  ;;  %v1905_v46 = vld [vmem:[%s2693_s8 + $0x50] sm:$0xf]  ;;  %v1865_v10 = vld [vmem:[%s2693_s8] sm:$0xf] }
 0x305   : > { %v1048_v49 = vmul.f32 %v2531_v51, %v1018_v48  ;;  %1829 = vmatmul.msk.bf16.vlgmr.msrb.gmra.mxu3 %vm954_vm2, %v1053_v40  ;;  %1830 = vmatmul.msk.bf16.vlgmr.msra.gmra.mxu0 %vm954_vm2, %v1054_v47  ;;  %v1243_v30 = vmul.f32 128.0, %v2145_v29  ;;  %v2036_v40 = vld [vmem:[%s2693_s8 + $0x54] sm:$0xf0]  ;;  %v2035_v47 = vld [vmem:[%s2693_s8 + $0x54] sm:$0xf] }
 0x306   : > { %1379 = vmatpush.bf16.msrb.mxu2 %v1914_v43  ;;  %v1906_v48 = vor.u32 %v2036_v40, %v1905_v46  ;;  %v2124_v44 = vld [vmem:[%s2692_s7] ss:$0 sm:$0xff] }
 0x307   : > { %v1052_v50 = vpack.c.bf16 %v1048_v49, %v1048_v49  ;;  %v1244_v31 = vsub.f32 1.0, %v1243_v30  ;;  %v1907_v49 = vld [vmem:[%s2693_s8 + $0x58] sm:$0xf0] }
 0x308   : > { %1231 = vmatpush.bf16.msrb.mxu1 %v2017_v11  ;;  %v2026_v11 = vld [vmem:[%s2693_s8 + $0x4] sm:$0xf0]  ;;  %v2044_v30 = vld [vmem:[#allocation9 + $0x18] sm:$0xff] }
 0x309   : > { %1828 = vmatmul.msk.bf16.vlgmr.msra.gmra.mxu2 %vm954_vm2, %v1052_v50  ;;  %vm1156_vm2 = vcmask 785408   ;;  %v1245_v32 = vmul.f32 %v2145_v29, %v1244_v31  ;;  %v1910_v50 = vor.u32 %v2035_v47, %v1907_v49  ;;  %v2052_v31 = vld [vmem:[#allocation9 + $0x58] sm:$0xff]  ;;  %v2042_v47 = vld [vmem:[#allocation9 + $0x8] sm:$0xff]  ;;  %v2041_v49 = vld [vmem:[#allocation9] sm:$0xff] }
 0x30a   : > { %1380 = vmatpush.bf16.msrb.mxu2 %v1906_v48  ;;  %v2050_v48 = vld [vmem:[#allocation9 + $0x48] sm:$0xff] }
 0x30b   : > { %v1246_v33 = vadd.f32 %v2145_v29, %v1245_v32 }
 0x35c   : > { %v1070_v52 = vpop.f32.mrf.mxu2 }
 0x35d   : > { %v1131_v13 = vpack.c.bf16 %v1070_v52, %v1070_v52  ;;  %v1897_v52 = vld [vmem:[%s2693_s8 + $0x40] sm:$0xf] }
 0x364   : > { %v1072_v53 = vpop.f32.mrf.mxu2 }
 0x365   : > { %v2034_v53 = vld [vmem:[%s2693_s8 + $0x44] sm:$0xf0] }
 0x366   : > { %v1898_v55 = vor.u32 %v2034_v53, %v1897_v52 }
 0x368   : > { %1381 = vmatpush.bf16.msrb.mxu2 %v1898_v55 }
 0x382   : > { %v1127_v57 = vpop.f32.mrf.mxu0 }
 0x383   : > { %v1134_v58 = vpack.c.bf16 %v1127_v57, %v1127_v57  ;;  %v1902_v57 = vor.u32 %v2033_v54, %v1899_v56 }
 0x385   : > { %v1146_v59 = vunpack.c.l.b16 %v1134_v58  ;;  %v1889_v58 = vld [vmem:[%s2693_s8 + $0x30] sm:$0xf] }
 0x387   : > { %v1147_v60 = vpack.c.b16 %v1146_v59, %v1146_v59  ;;  %v2032_v59 = vld [vmem:[%s2693_s8 + $0x34] sm:$0xf0] }
 0x388   : > { %v1108_v51 = vpop.f32.mrf.mxu3 }
 0x389   : > { %1148 = vrot.lane.b32.xlu0 %v1147_v60, %s2328_s24  ;;  %v1133_v2 = vpack.c.bf16 %v1108_v51, %v1108_v51  ;;  %v2031_v60 = vld [vmem:[%s2693_s8 + $0x34] sm:$0xf]  ;;  %v1890_v51 = vor.u32 %v2032_v59, %v1889_v58  ;;  %s559_s24 = scalar_lea.vmem %s2699_s14, %s1725_s2 }
 0x38a   : > { %v1129_v61 = vpop.f32.mrf.mxu0 }
 0x38b   : > { %v1141_v5 = vunpack.c.l.b16 %v1133_v2  ;;  %v1891_v61 = vld [vmem:[%s2693_s8 + $0x38] sm:$0xf0]  ;;  %1382 = vmatpush.bf16.msrb.mxu2 %v1890_v51 }
 0x38c   : > { %v1089_v62 = vpop.f32.mrf.mxu2 }
 0x38d   : > { %v1132_v63 = vpack.c.bf16 %v1089_v62, %v1089_v62  ;;  %v1142_v6 = vpack.c.b16 %v1141_v5, %v1141_v5  ;;  %v1894_v62 = vor.u32 %v2031_v60, %v1891_v61  ;;  %v1873_v5 = vld [vmem:[%s2693_s8 + $0x10] sm:$0xf] }
 0x38f   : > { %v1136_v0 = vunpack.c.l.b16 %v1132_v63  ;;  %v1881_v63 = vld [vmem:[%s2693_s8 + $0x20] sm:$0xf] }
 0x390   : > { %v1110_v1 = vpop.f32.mrf.mxu3 }
 0x391   : > { %v1137_v3 = vpack.c.b16 %v1136_v0, %v1136_v0  ;;  %v2030_v0 = vld [vmem:[%s2693_s8 + $0x24] sm:$0xf0]  ;;  %v2029_v1 = vld [vmem:[%s2693_s8 + $0x24] sm:$0xf] }
 0x392   : > { %v1882_v2 = vor.u32 %v2030_v0, %v1881_v63  ;;  %v2125_v63 = vld [vmem:[%s2696_s11] ss:$0 sm:$0xff] }
 0x393   : > { %1138 = vrot.lane.b32.xlu1 %v1137_v3, %s2329_s26  ;;  %v1883_v3 = vld [vmem:[%s2693_s8 + $0x28] sm:$0xf0] }
 0x394   : > { %v1091_v4 = vpop.f32.mrf.mxu2  ;;  %1383 = vmatpush.bf16.msrb.mxu2 %v1882_v2 }
 0x395   : > { %v1886_v4 = vor.u32 %v2029_v1, %v1883_v3 }
 0x39b   : > { %1143 = vrot.lane.b32.xlu1 %v1142_v6, %s2327_s18  ;;  %v2028_v6 = vld [vmem:[%s2693_s8 + $0x14] sm:$0xf0] }
 0x39c   : > { %v1874_v8 = vor.u32 %v2028_v6, %v1873_v5 }
 0x39e   : > { %1384 = vmatpush.bf16.msrb.mxu2 %v1874_v8 }
 0x3fb   : > { %v1149_v17 = vpop.permute.xlu0 %1148 }
 0x405   : > { %v1139_v12 = vpop.permute.xlu1 %1138 }
 0x406   : > { %v1152_v14 = vsel %vm877_vm1, %v1131_v13, %v1139_v12  ;;  %vm1247_vm1 = vweird.f32 %v2145_v29  ;;  %v1878_v12 = vor.u32 %v2027_v7, %v1875_v9  ;;  %v2025_v13 = vld [vmem:[%s2693_s8 + $0x4] sm:$0xf] }
 0x407   : > { %v2564_v34 = vsel %vm1247_vm1, %v2145_v29, %v1246_v33 }
 0x40d   : > { %v1144_v15 = vpop.permute.xlu1 %1143 }
 0x40e   : > { %v1155_v18 = vsel %vm1153_vm0, %v1152_v14, %v1144_v15  ;;  %v1867_v14 = vld [vmem:[%s2693_s8 + $0x8] sm:$0xf0]  ;;  %v1866_v15 = vor.u32 %v2026_v11, %v1865_v10 }
 0x40f   : > { %v1158_v19 = vsel %vm1156_vm2, %v1155_v18, %v1149_v17  ;;  %v1870_v17 = vor.u32 %v2025_v13, %v1867_v14  ;;  %v2048_v18 = vld [vmem:[#allocation9 + $0x38] sm:$0xff] }
 0x410   : > { %1232 = vmatmul.bf16.vlgmr.msrb.gmra.mxu1 %v1158_v19  ;;  %1385 = vmatpush.bf16.msrb.mxu2 %v1866_v15  ;;  %v2056_v19 = vld [vmem:[#allocation9 + $0x78] sm:$0xff] }
 0x411   : > { %1540 = vmatpush.bf16.msrb.mxu0 %v2048_v18  ;;  %1553 = vmatpush.bf16.msra.mxu1 %v2056_v19 }
 0x415   : > { %1554 = vmatpush.bf16.msra.mxu1 %v2055_v23 }
 0x48d   : > { %v1233_v20 = vpop.f32.mrf.mxu1 }
 0x48e   : > { %v1237_v21 = vadd.f32 %v1233_v20, %v2478_v16  ;;  %v1923_v16 = vld [vmem:[%s2693_s8 + $0x78] sm:$0xf0] }
 0x48f   : > { %v1926_v28 = vor.u32 %v2039_v26, %v1923_v16  ;;  %v2054_v26 = vld [vmem:[#allocation9 + $0x68] sm:$0xff]  ;;  %v2053_v16 = vld [vmem:[#allocation9 + $0x60] sm:$0xff] }
 0x490   : > { %1240 = vadd.xlane.f32.xlu1 %v1237_v21  ;;  %1555 = vmatpush.bf16.msra.mxu1 %v2054_v26 }
 0x491   : > { %1391 = vmatpush.bf16.msra.mxu3 %v1926_v28 }
 0x494   : > { %1556 = vmatpush.bf16.msra.mxu1 %v2053_v16 }
 0x495   : > { %v1235_v22 = vpop.f32.mrf.mxu1  ;;  %1392 = vmatpush.bf16.msra.mxu3 %v1918_v45 }
 0x496   : > { %v2047_v22 = vld [vmem:[#allocation9 + $0x30] sm:$0xff] }
 0x497   : > { %1541 = vmatpush.bf16.msrb.mxu0 %v2047_v22 }
 0x498   : > { %1557 = vmatpush.bf16.msra.mxu1 %v2052_v31 }
 0x499   : > { %1393 = vmatpush.bf16.msra.mxu3 %v1910_v50  ;;  %v2049_v50 = vld [vmem:[#allocation9 + $0x40] sm:$0xff] }
 0x49b   : > { %1542 = vmatpush.bf16.msrb.mxu0 %v2046_v25 }
 0x49d   : > { %1394 = vmatpush.bf16.msra.mxu3 %v1902_v57 }
 0x49f   : > { %1543 = vmatpush.bf16.msrb.mxu0 %v2045_v27 }
 0x4a1   : > { %1395 = vmatpush.bf16.msra.mxu3 %v1894_v62 }
 0x4a3   : > { %1544 = vmatpush.bf16.msrb.mxu0 %v2044_v30 }
 0x4a5   : > { %1396 = vmatpush.bf16.msra.mxu3 %v1886_v4 }
 0x4a9   : > { %1397 = vmatpush.bf16.msra.mxu3 %v1878_v12 }
 0x4ad   : > { %1398 = vmatpush.bf16.msra.mxu3 %v1870_v17 }
 0x503   : > { %v1241_v35 = vpop.xlane.xlu1 %1240 }
 0x504   : > { %v1249_v36 = vmul.f32 %v2564_v34, %v1241_v35  ;;  %v2043_v35 = vld [vmem:[#allocation9 + $0x10] sm:$0xff] }
 0x505   : > { %1545 = vmatpush.bf16.msrb.mxu0 %v2043_v35 }
 0x506   : > { %v2567_v37 = vsub.f32 %v1237_v21, %v1249_v36  ;;  %v2051_v36 = vld [vmem:[#allocation9 + $0x50] sm:$0xff] }
 0x507   : > { %1558 = vmatpush.bf16.msra.mxu1 %v2051_v36 }
 0x508   : > { %v1251_v38 = vmul.f32 %v2567_v37, %v2567_v37 }
 0x509   : > { %1546 = vmatpush.bf16.msrb.mxu0 %v2042_v47 }
 0x50a   : > { %1252 = vadd.xlane.f32.xlu0 %v1251_v38 }
 0x50b   : > { %1559 = vmatpush.bf16.msra.mxu1 %v2050_v48 }
 0x50d   : > { %1547 = vmatpush.bf16.msrb.mxu0 %v2041_v49 }
 0x50f   : > { %1560 = vmatpush.bf16.msra.mxu1 %v2049_v50 }
 0x57d   : > { %v1253_v20 = vpop.xlane.xlu0 %1252 }
 0x57e   : > { %v1254_v21 = vmul.f32 %v1253_v20, %v2564_v34 }
 0x580   : > { %v1255_v24 = vadd.f32 1e-12, %v1254_v21  ;;  %v2126_v21 = vld [vmem:[%s2697_s12] ss:$0 sm:$0xff] }
 0x582   : > { %2146 = vrsqrt.f32 %v1255_v24  ;;  %vm1262_vm7 = vweird.f32 %v1255_v24 }
 0x588   : > { %v2147_v28 = vpop.eup %2146 }
 0x589   : > { %v1257_v29 = vmul.f32 %v2147_v28, %v1255_v24  ;;  %vm1263_vm6 = vweird.f32 %v2147_v28 }
 0x58a   : > { %vm1264_vm8 = vmor %vm1262_vm7, %vm1263_vm6 }
 0x58b   : > { %v1258_v32 = vmul.f32 %v2147_v28, %v1257_v29 }
 0x58d   : > { %v1259_v33 = vmul.f32 0.5, %v1258_v32 }
 0x58f   : > { %v1260_v38 = vsub.f32 1.5, %v1259_v33 }
 0x591   : > { %v1261_v39 = vmul.f32 %v2147_v28, %v1260_v38 }
 0x593   : > { %v1265_v42 = vsel %vm1264_vm8, %v2147_v28, %v1261_v39 }
 0x594   : > { %v1266_v43 = vmul.f32 %v1265_v42, %v2567_v37  ;;  %v1292_v37 = vld [vmem:[%s2694_s9] sm:$0x3] }
 0x595   : > { %v1294_v52 = vperm.slane %v1292_v37, 0  ;;  %v1295_v53 = vperm.slane %v1292_v37, 1 }
 0x596   : > { %v1270_v45 = vmul.f32 %v2123_v41, %v1266_v43 }
 0x598   : > { %v1274_v46 = vadd.f32 %v2124_v44, %v1270_v45 }
 0x59a   : > { %v1275_v40 = vpack.c.bf16 %v1274_v46, %v1274_v46 }
 0x59c   : > { %1386 = vmatmul.bf16.vlgmr.msrb.gmra.mxu2 %v1275_v40  ;;  %1399 = vmatmul.bf16.vlgmr.msra.gmra.mxu3 %v1275_v40 }
 0x61f   : > { %v1387_v54 = vpop.f32.mrf.mxu2  ;;  %v1400_v55 = vpop.f32.mrf.mxu3 }
 0x620   : > { %v1388_v56 = vadd.f32 %v1387_v54, %v1294_v52  ;;  %v1401_v57 = vadd.f32 %v1400_v55, %v1295_v53 }
 0x622   : > { %v1404_v58 = vmax.f32 %v1388_v56, 0.0  ;;  %v1405_v59 = vmax.f32 %v1401_v57, 0.0 }
 0x624   : > { %v1406_v60 = vpack.c.bf16 %v1404_v58, %v1404_v58  ;;  %v1407_v51 = vpack.c.bf16 %v1405_v59, %v1405_v59 }
 0x626   : > { %1548 = vmatmul.bf16.vlgmr.msrb.gmra.mxu0 %v1406_v60  ;;  %1561 = vmatmul.bf16.vlgmr.msra.gmra.mxu1 %v1407_v51 }
 0x627   : > { %v1389_v61 = vpop.f32.mrf.mxu2  ;;  %v1402_v62 = vpop.f32.mrf.mxu3 }
 0x6a3   : > { %v1549_v0 = vpop.f32.mrf.mxu0  ;;  %v1562_v1 = vpop.f32.mrf.mxu1 }
 0x6a4   : > { %v1550_v2 = vadd.f32 %v2125_v63, %v1549_v0 }
 0x6a6   : > { %v1563_v3 = vadd.f32 %v1562_v1, %v1550_v2 }
 0x6a8   : > { %v1566_v4 = vadd.f32 %v1563_v3, %v1274_v46 }
 0x6aa   : > { %1569 = vadd.xlane.f32.xlu2 %v1566_v4 }
 0x6ab   : > { %v1551_v5 = vpop.f32.mrf.mxu0  ;;  %v1564_v6 = vpop.f32.mrf.mxu1 }
 0x71d   : > { %v1570_v7 = vpop.xlane.xlu2 %1569 }
 0x71e   : > { %v1571_v8 = vmul.f32 %v1570_v7, %v2564_v34 }
 0x720   : > { %v1572_v9 = vsub.f32 %v1566_v4, %v1571_v8 }
 0x722   : > { %v1573_v10 = vmul.f32 %v1572_v9, %v1572_v9 }
 0x724   : > { %1574 = vadd.xlane.f32.xlu1 %v1573_v10 }
 0x797   : > { %v1575_v11 = vpop.xlane.xlu1 %1574 }
 0x798   : > { %v1576_v12 = vmul.f32 %v1575_v11, %v2564_v34  ;;  %v2127_v34 = vld [vmem:[%s2698_s13] ss:$0 sm:$0xff] }
 0x79a   : > { %v1577_v13 = vadd.f32 1e-12, %v1576_v12 }
 0x79c   : > { %2148 = vrsqrt.f32 %v1577_v13  ;;  %vm1584_vm10 = vweird.f32 %v1577_v13 }
 0x7a2   : > { %v2149_v14 = vpop.eup %2148 }
 0x7a3   : > { %v1579_v15 = vmul.f32 %v2149_v14, %v1577_v13  ;;  %vm1585_vm9 = vweird.f32 %v2149_v14 }
 0x7a4   : > { %vm1586_vm11 = vmor %vm1584_vm10, %vm1585_vm9 }
 0x7a5   : > { %v1580_v17 = vmul.f32 %v2149_v14, %v1579_v15 }
 0x7a7   : > { %v1581_v18 = vmul.f32 0.5, %v1580_v17 }
 0x7a9   : > { %v1582_v19 = vsub.f32 1.5, %v1581_v18 }
 0x7ab   : > { %v1583_v20 = vmul.f32 %v2149_v14, %v1582_v19 }
 0x7ad   : > { %v1587_v22 = vsel %vm1586_vm11, %v2149_v14, %v1583_v20 }
 0x7ae   : > { %v1588_v23 = vmul.f32 %v1587_v22, %v1572_v9 }
 0x7b0   : > { %v1592_v24 = vmul.f32 %v2126_v21, %v1588_v23 }
 0x7b2   : > { %v1596_v25 = vadd.f32 %v2127_v34, %v1592_v24 }
 0x7b4   : > { %1597 = vst [vmem:[%s559_s24] sm:$0xff] %v1596_v25 }
 0x7b5 PF: > { %s2710_s26 = sld [smem:[#allocation13_spill]] }
 0x7bb   : > { %s27_s29 = sadd.s32 1, %s2710_s26  }
 0x7bc   : > { %p24_p7 = scmp.ge.s32.totalorder %s27_s29, 4  }
 0x7be   :  { %26 = sbr.rel (!%p24_p7) target bundleno = 7 (0x7), region = 130 }
 0x7c3   :  { %1617 = vsyncpa [#allocation3], 1 }
 0x7c4   :  { %1619 = vsyncpa [#allocation3 + $0x1], 1 }
 0x7c5   :  { %1620 = vsyncpa [#allocation5], 1 }
 0x7c6   :  { %1621 = vsyncpa [#allocation8], 1 }

// kernel: encoder_forward.3
= control target key start
LH: loop header
LB: loop body
LE: loop exit
PB: predicated region body
PF: predicated region fallthrough
CT: control target
= control target key end

     0   :  { %s2861_s0 = inlined_call_operand.vmem [shape: f32[2,8,128], index: 0, kind: input, shape index: {}]   ;;  %s2862_s1 = inlined_call_operand.vmem [shape: f32[2,1,8], index: 1, kind: input, shape index: {}]   ;;  %s2863_s2 = inlined_call_operand.hbm [shape: bf16[128,128], index: 2, kind: input, shape index: {}]   ;;  %s2864_s3 = inlined_call_operand.hbm [shape: bf16[128,128], index: 3, kind: input, shape index: {}]   ;;  %s2865_s4 = inlined_call_operand.hbm [shape: bf16[128,128], index: 4, kind: input, shape index: {}]   ;;  %s2866_s5 = inlined_call_operand.hbm [shape: bf16[128,128], index: 5, kind: input, shape index: {}]   ;;  %s2867_s6 = inlined_call_operand.vmem [shape: f32[1,128], index: 6, kind: input, shape index: {}]   ;;  %s2868_s7 = inlined_call_operand.vmem [shape: f32[1,128], index: 7, kind: input, shape index: {}]   ;;  %s2869_s8 = inlined_call_operand.hbm [shape: bf16[128,256], index: 8, kind: input, shape index: {}]   ;;  %s2870_s9 = inlined_call_operand.vmem [shape: f32[1,256], index: 9, kind: input, shape index: {}]   ;;  %s2871_s10 = inlined_call_operand.hbm [shape: bf16[256,128], index: 10, kind: input, shape index: {}]   ;;  %s2872_s11 = inlined_call_operand.vmem [shape: f32[1,128], index: 11, kind: input, shape index: {}]   ;;  %s2873_s12 = inlined_call_operand.vmem [shape: f32[1,128], index: 12, kind: input, shape index: {}]   ;;  %s2874_s13 = inlined_call_operand.vmem [shape: f32[1,128], index: 13, kind: input, shape index: {}]   ;;  %s2875_s14 = inlined_call_operand.hbm [shape: f32[2,8,128], index: 14, kind: output, shape index: {}]  }
   0x1   :  { %2882 = sst [smem:[#allocation25_spill]] %s2864_s3 }
   0x2   :  { %2883 = sst [smem:[#allocation26_spill]] %s2866_s5 }
   0x3   :  { %2884 = sst [smem:[#allocation27_spill]] %s2874_s13 }
   0x4   :  { %19 = vsyncpa [#allocation3], 0 }
   0x5   :  { %20 = vsyncpa [#allocation6], 0 }
   0x6   :  { %21 = vsyncpa [#allocation9], 0 }
   0x7   :  { %22 = vsyncpa [#allocation12], 0 }
   0x8   :  { %23 = vsyncpa [#allocation4], 0 }
   0x9   :  { %25 = vsyncpa [#allocation4 + $0x1], 0  ;;  %s2594_s29 = smov 0   ;;  %s2596_s30 = smov 0  }
   0xa   :  { %s2598_s15 = smov 0   ;;  %s2600_s16 = smov 0  }
   0xb LB: > { %2885 = sst [smem:[#allocation19_spill]] %s2491_s29  ;;  %s2615_s17 = sadd.s32 4294967295, %s2503_s16   ;;  %s2503_s16 = sphi %s2600_s16, %s2901_s16   ;;  %s2499_s15 = sphi %s2598_s15, %s2903_s15   ;;  %s2495_s30 = sphi %s2596_s30, %s2905_s30   ;;  %s2491_s29 = sphi %s2594_s29, %s2904_s29  }
   0xc   : > { %2886 = sst [smem:[#allocation20_spill]] %s2499_s15  ;;  %s1759_s18 = sadd.s32 4294967294, %s2503_s16  }
   0xd   : > { %2887 = sst [smem:[#allocation21_spill]] %s2503_s16  ;;  %s2619_s19 = sadd.s32 1, %s2503_s16  }
   0xe   : > { %2888 = sst [smem:[#allocation22_spill]] %s2619_s19  ;;  %s342_s20 = sadd.s32 1, %s2499_s15 }
   0xf   : > { %s339_s21 = ssub.s32 %s2503_s16, %s2619_s19  ;;  %p352_p0 = scmp.ne.s32.totalorder %s2499_s15, %s2495_s30 }
  0x10   : > { %p340_p1 = scmp.eq.s32.totalorder %s339_s21, 0  ;;  %p353_p2 = scmp.eq.s32.totalorder %s2615_s17, 1 }
  0x11   : > { %p358_p3 = scmp.ne.s32.totalorder %s2495_s30, %s2491_s29  ;;  %p359_p4 = scmp.eq.s32.totalorder %s1759_s18, 1 }
  0x12   : > { %s2630_s22 = scalar_select %p340_p1, %s2499_s15, %s342_s20  }
  0x13   : > { %p2632_p5 = por %p353_p2, %p352_p0  ;;  %p2636_p6 = por %p359_p4, %p358_p3 }
  0x14   : > { %2889 = sst [smem:[#allocation23_spill]] %s2630_s22  ;;  %p1760_p7 = scmp.ge.s32.totalorder %s2503_s16, 1 }
  0x15   : > { %s2891_s24 = scalar_select %p2636_p6, 1, 0 }
  0x16   : > { %p366_p8 = scmp.lt.s32.totalorder %s2503_s16, 3  ;;  %p2158_p9 = scmp.eq.s32.totalorder %s2615_s17, 0 }
  0x17   : > { %2892 = sst [smem:[#allocation24_spill]] %s2891_s24  ;;  %s2505_s15 = smov [#allocation5]  }
  0x18   : > { %p2643_p10 = pnand %p1760_p7, %p366_p8  ;;  %s2894_s3 = sld [smem:[#allocation25_spill]] }
  0x19   : > { %s2895_s5 = sld [smem:[#allocation26_spill]]  ;;  %s393_s19 = sshll.u32 %s2505_s15, 4  ;;  %s394_s19 = int_to_ptr.vmem [resolvable:$true] %s393_s19 }
  0x1a   : > { %p2135_p11 = pneg %p2643_p10  ;;  %s2506_s26 = smov 64  }
  0x1b   : > { %s2507_s27 = smov 4   ;;  %s2508_s18 = smov [#allocation8]  }
  0x1c   : > { %p2657_p12 = pnand %p2158_p9, %p2135_p11  ;;  %s421_s20 = sshll.u32 %s2508_s18, 4  ;;  %s422_s20 = int_to_ptr.vmem [resolvable:$true] %s421_s20 }
  0x1d   : > { %s377_s24 = sshll.u32 %s2863_s2, 4  ;;  %s405_s16 = sshll.u32 %s2865_s4, 4  ;;  %s378_s24 = int_to_ptr.hbm [resolvable:$true] %s377_s24  ;;  %s406_s16 = int_to_ptr.hbm [resolvable:$true] %s405_s16 }
  0x1e   : > { %s391_s28 = sshll.u32 %s2894_s3, 4  ;;  %s2509_s13 = smov [#allocation2]   ;;  %s392_s28 = int_to_ptr.hbm [resolvable:$true] %s391_s28 }
  0x1f   : > { %s419_s21 = sshll.u32 %s2895_s5, 4  ;;  %s2510_s3 = smov [#allocation7]   ;;  %s420_s21 = int_to_ptr.hbm [resolvable:$true] %s419_s21 }
  0x20   : > { %2141 = dma.hbm_to_vmem [thread:$0]  (!%p2657_p12), %s392_s28, 1024, %s394_s19, [#allocation6], %s2506_s26, %s2506_s26, %s2507_s27  }
  0x21   : > { %2147 = dma.hbm_to_vmem [thread:$0]  (!%p2657_p12), %s420_s21, 1024, %s422_s20, [#allocation9], %s2506_s26, %s2506_s26, %s2507_s27  }
  0x22   : > { %s379_s19 = sshll.u32 %s2509_s13, 4  ;;  %s407_s5 = sshll.u32 %s2510_s3, 4  ;;  %s380_s19 = int_to_ptr.vmem [resolvable:$true] %s379_s19  ;;  %s408_s5 = int_to_ptr.vmem [resolvable:$true] %s407_s5 }
  0x23   : > { %2138 = dma.hbm_to_vmem [thread:$0]  (!%p2657_p12), %s378_s24, 1024, %s380_s19, [#allocation3], %s2506_s26, %s2506_s26, %s2507_s27  }
  0x24   : > { %s439_s21 = sshll.u32 %s2869_s8, 4  ;;  %s2511_s13 = smov [#allocation10]   ;;  %s440_s21 = int_to_ptr.hbm [resolvable:$true] %s439_s21 }
  0x25   : > { %2144 = dma.hbm_to_vmem [thread:$0]  (!%p2657_p12), %s406_s16, 1024, %s408_s5, [#allocation6], %s2506_s26, %s2506_s26, %s2507_s27  }
  0x26   : > { %s441_s29 = sshll.u32 %s2511_s13, 4  ;;  %s456_s24 = sshll.u32 %s2871_s10, 4  ;;  %s442_s29 = int_to_ptr.vmem [resolvable:$true] %s441_s29  ;;  %s457_s24 = int_to_ptr.hbm [resolvable:$true] %s456_s24 }
  0x27   : > { %s2512_s19 = smov 128   ;;  %s2513_s3 = smov 8  }
  0x28   : > { %2150 = dma.hbm_to_vmem [thread:$0]  (!%p2657_p12), %s440_s21, 2048, %s442_s29, [#allocation9], %s2512_s19, %s2512_s19, %s2513_s3  }
  0x29   : > { %s2514_s28 = smov [#allocation11]   ;;  %496 = sbr.rel (%p2643_p10) target bundleno = 1992 (0x7c8), region = 76 }
  0x2a   : > { %s458_s18 = sshll.u32 %s2514_s28, 4  ;;  %s459_s18 = int_to_ptr.vmem [resolvable:$true] %s458_s18 }
  0x2b   : > { %2153 = dma.hbm_to_vmem [thread:$0]  (!%p2657_p12), %s457_s24, 2048, %s459_s18, [#allocation12], %s2506_s26, %s2506_s26, %s2507_s27  }
  0x2e   : > { %2470 = dma.done.wait (%p2158_p9), [#allocation3], 1024  }
  0x2f   : > { %2472 = vsyncadd (%p2158_p9), [#allocation3], 4294966272 }
  0x30   : > { %2474 = dma.done.wait (%p2158_p9), [#allocation6], 2048  }
  0x31   : > { %2476 = vsyncadd (%p2158_p9), [#allocation6], 4294965248 }
  0x32   : > { %2478 = dma.done.wait (%p2158_p9), [#allocation9], 3072  }
  0x33   : > { %2480 = vsyncadd (%p2158_p9), [#allocation9], 4294964224 }
  0x34   : > { %2482 = dma.done.wait (%p2158_p9), [#allocation12], 2048  }
  0x35   : > { %2484 = vsyncadd (%p2158_p9), [#allocation12], 4294965248  ;;  %v2052_v0 = vld [vmem:[#allocation2 + $0x38] sm:$0xff]  ;;  %v2051_v2 = vld [vmem:[#allocation2 + $0x30] sm:$0xff]  ;;  %p570_p13 = scmp.lt.s32.totalorder %s2615_s17, 1  ;;  %s2515_s5 = smov 64  }
  0x36   : > { %v2060_v1 = vld [vmem:[#allocation5 + $0x38] sm:$0xff]  ;;  %644 = vmatpush.bf16.msra.mxu0 %v2052_v0  ;;  %v2059_v3 = vld [vmem:[#allocation5 + $0x30] sm:$0xff]  ;;  %v2050_v4 = vld [vmem:[#allocation2 + $0x28] sm:$0xff]  ;;  %s2516_s21 = smov 96   ;;  %s2517_s13 = smov 32   ;;  %vm823_vm0 = vcmask 1043456  }
  0x37   : > { %722 = vmatpush.bf16.msra.mxu1 %v2060_v1  ;;  %v2058_v5 = vld [vmem:[#allocation5 + $0x28] sm:$0xff]  ;;  %v2049_v6 = vld [vmem:[#allocation2 + $0x20] sm:$0xff]  ;;  %v2048_v8 = vld [vmem:[#allocation2 + $0x18] sm:$0xff]  ;;  %s2720_s16 = scalar_select %p570_p13, %s2615_s17, 1  ;;  %vm894_vm1 = vcmask 261120   ;;  %vm971_vm2 = vcmask 64512  }
  0x38   : > { %v2057_v7 = vld [vmem:[#allocation5 + $0x20] sm:$0xff]  ;;  %v2056_v9 = vld [vmem:[#allocation5 + $0x18] sm:$0xff]  ;;  %v2047_v10 = vld [vmem:[#allocation2 + $0x10] sm:$0xff]  ;;  %s2897_s18 = sld [smem:[#allocation27_spill]]  ;;  %s2445_s20 = scalar_lea.hbm %s2875_s14, 16 }
  0x39   : > { %v2055_v11 = vld [vmem:[#allocation5 + $0x10] sm:$0xff]  ;;  %s1776_s22 = sshll.u32 %s2720_s16, 3  ;;  %v2046_v12 = vld [vmem:[#allocation2 + $0x8] sm:$0xff]  ;;  %v2045_v14 = vld [vmem:[#allocation2] sm:$0xff]  ;;  %s576_s15 = scalar_lea.vmem %s2862_s1, %s2720_s16 }
  0x3a   : > { %645 = vmatpush.bf16.msra.mxu0 %v2051_v2  ;;  %v2054_v13 = vld [vmem:[#allocation5 + $0x8] sm:$0xff]  ;;  %s573_s27 = scalar_lea.vmem %s2861_s0, %s1776_s22  ;;  %v2053_v15 = vld [vmem:[#allocation5] sm:$0xff]  ;;  %v2068_v28 = vld [vmem:[#allocation7 + $0x38] sm:$0xff] }
  0x3b   : > { %723 = vmatpush.bf16.msra.mxu1 %v2059_v3  ;;  %v2726_v16 = vld [vmem:[%s573_s27] sm:$0xff]  ;;  %800 = vmatpush.bf16.msra.mxu2 %v2068_v28  ;;  %v2067_v29 = vld [vmem:[#allocation7 + $0x30] sm:$0xff]  ;;  %v2066_v30 = vld [vmem:[#allocation7 + $0x28] sm:$0xff] }
  0x3c   : > { %v2730_v17 = vpack.c.bf16 %v2726_v16, %v2726_v16  ;;  %v2065_v31 = vld [vmem:[#allocation7 + $0x20] sm:$0xff]  ;;  %v2064_v35 = vld [vmem:[#allocation7 + $0x18] sm:$0xff]  ;;  %v2063_v41 = vld [vmem:[#allocation7 + $0x10] sm:$0xff] }
  0x3d   : > { %v2062_v46 = vld [vmem:[#allocation7 + $0x8] sm:$0xff]  ;;  %v2061_v59 = vld [vmem:[#allocation7] sm:$0xff] }
  0x3e   : > { %646 = vmatpush.bf16.msra.mxu0 %v2050_v4  ;;  %v2217_v2 = vld [vmem:[%s576_s15] ss:$0 sm:$0xff] }
  0x3f   : > { %724 = vmatpush.bf16.msra.mxu1 %v2058_v5  ;;  %801 = vmatpush.bf16.msra.mxu2 %v2067_v29 }
  0x42   : > { %647 = vmatpush.bf16.msra.mxu0 %v2049_v6 }
  0x43   : > { %725 = vmatpush.bf16.msra.mxu1 %v2057_v7  ;;  %802 = vmatpush.bf16.msra.mxu2 %v2066_v30 }
  0x46   : > { %648 = vmatpush.bf16.msra.mxu0 %v2048_v8 }
  0x47   : > { %726 = vmatpush.bf16.msra.mxu1 %v2056_v9  ;;  %803 = vmatpush.bf16.msra.mxu2 %v2065_v31 }
  0x4a   : > { %649 = vmatpush.bf16.msra.mxu0 %v2047_v10 }
  0x4b   : > { %727 = vmatpush.bf16.msra.mxu1 %v2055_v11  ;;  %804 = vmatpush.bf16.msra.mxu2 %v2064_v35 }
  0x4e   : > { %650 = vmatpush.bf16.msra.mxu0 %v2046_v12 }
  0x4f   : > { %728 = vmatpush.bf16.msra.mxu1 %v2054_v13  ;;  %805 = vmatpush.bf16.msra.mxu2 %v2063_v41 }
  0x52   : > { %651 = vmatpush.bf16.msra.mxu0 %v2045_v14 }
  0x53   : > { %729 = vmatpush.bf16.msra.mxu1 %v2053_v15  ;;  %806 = vmatpush.bf16.msra.mxu2 %v2062_v46 }
  0x55   : > { %652 = vmatmul.bf16.vlgmr.msra.gmra.mxu0 %v2730_v17 }
  0x56   : > { %730 = vmatmul.bf16.vlgmr.msra.gmra.mxu1 %v2730_v17 }
  0x57   : > { %807 = vmatpush.bf16.msra.mxu2 %v2061_v59 }
  0x5a   : > { %808 = vmatmul.bf16.vlgmr.msra.gmra.mxu2 %v2730_v17 }
  0xd2   : > { %v653_v18 = vpop.f32.mrf.mxu0 }
  0xd3   : > { %v731_v19 = vpop.f32.mrf.mxu1  ;;  %v657_v20 = vpack.c.bf16 %v653_v18, %v653_v18 }
  0xd4   : > { %v735_v21 = vpack.c.bf16 %v731_v19, %v731_v19 }
  0xd5   : > { %v815_v22 = vunpack.c.l.b16 %v657_v20 }
  0xd6   : > { %v841_v23 = vunpack.c.l.b16 %v735_v21 }
  0xd7   : > { %v816_v24 = vpack.c.b16 %v815_v22, %v815_v22 }
  0xd8   : > { %v842_v25 = vpack.c.b16 %v841_v23, %v841_v23 }
  0xd9   : > { %819 = vrot.lane.b32.xlu2 %v816_v24, %s2515_s5 }
  0xda   : > { %845 = vrot.lane.b32.xlu1 %v842_v25, %s2515_s5  ;;  %843 = vrot.lane.b32.xlu0 %v842_v25, %s2516_s21  ;;  %v655_v26 = vpop.f32.mrf.mxu0 }
  0xdb   : > { %v733_v27 = vpop.f32.mrf.mxu1 }
  0xdd   : > { %v809_v7 = vpop.f32.mrf.mxu2 }
  0xde   : > { %v813_v18 = vpack.c.bf16 %v809_v7, %v809_v7 }
  0xe1   : > { %821 = vrot.lane.b32.xlu2 %v816_v24, %s2517_s13 }
  0xe2   : > { %847 = vrot.lane.b32.xlu1 %v842_v25, %s2517_s13  ;;  %817 = vrot.lane.b32.xlu0 %v816_v24, %s2516_s21 }
  0xe5   : > { %v811_v10 = vpop.f32.mrf.mxu2 }
 0x133   : > { %v820_v32 = vpop.permute.xlu2 %819 }
 0x13b   : > { %v822_v49 = vpop.permute.xlu2 %821 }
 0x13c   : > { %v829_v56 = vsel %vm823_vm0, %v820_v32, %v822_v49 }
 0x13d   : > { %v835_v60 = vunpack.c.h.b16 %v829_v56  ;;  %v834_v0 = vunpack.c.l.b16 %v829_v56 }
 0x13f   : > { %v839_v61 = vpack.c.b16 %v835_v60, %v835_v60  ;;  %v838_v1 = vpack.c.b16 %v834_v0, %v834_v0 }
 0x14c   : > { %v846_v33 = vpop.permute.xlu1 %845  ;;  %v844_v34 = vpop.permute.xlu0 %843 }
 0x14d   : > { %v851_v36 = vsel %vm823_vm0, %v735_v21, %v844_v34 }
 0x14e   : > { %v858_v37 = vunpack.c.h.b16 %v851_v36  ;;  %v857_v38 = vunpack.c.l.b16 %v851_v36 }
 0x150   : > { %v861_v39 = vpack.c.b16 %v857_v38, %v857_v38  ;;  %v862_v40 = vpack.c.b16 %v858_v37, %v858_v37 }
 0x152   : > { %v899_v42 = vsel %vm894_vm1, %v861_v39, 0  ;;  %v918_v43 = vsel %vm894_vm1, %v862_v40, 0 }
 0x153   : > { %908 = vmatpush.bf16.xpose.msra.mxu3 %v899_v42 }
 0x154   : > { %v848_v44 = vpop.permute.xlu1 %847  ;;  %v818_v45 = vpop.permute.xlu0 %817 }
 0x155   : > { %v854_v47 = vsel %vm823_vm0, %v846_v33, %v848_v44  ;;  %v826_v48 = vsel %vm823_vm0, %v657_v20, %v818_v45  ;;  %v866_v20 = vunpack.c.l.b16 %v813_v18 }
 0x156   : > { %v859_v50 = vunpack.c.l.b16 %v854_v47  ;;  %v860_v51 = vunpack.c.h.b16 %v854_v47  ;;  %v832_v52 = vunpack.c.l.b16 %v826_v48  ;;  %v833_v62 = vunpack.c.h.b16 %v826_v48 }
 0x157   : > { %v867_v23 = vpack.c.b16 %v866_v20, %v866_v20 }
 0x158   : > { %v863_v53 = vpack.c.b16 %v859_v50, %v859_v50  ;;  %v836_v54 = vpack.c.b16 %v832_v52, %v832_v52  ;;  %v864_v55 = vpack.c.b16 %v860_v51, %v860_v51  ;;  %v837_v63 = vpack.c.b16 %v833_v62, %v833_v62 }
 0x15a   : > { %1873 = vmatmul.msk.bf16.vlgmr.msra.gmra.mxu3 %vm894_vm1, %v836_v54  ;;  %v937_v57 = vsel %vm894_vm1, %v863_v53, 0  ;;  %v956_v58 = vsel %vm894_vm1, %v864_v55, 0 }
 0x15b   : > { %927 = vmatpush.bf16.xpose.msrb.mxu3 %v918_v43  ;;  %965 = vmatpush.bf16.xpose.msrb.mxu0 %v956_v58 }
 0x162   : > { %1876 = vmatmul.msk.bf16.vlgmr.msrb.gmra.mxu0 %vm894_vm1, %v839_v61 }
 0x163   : > { %946 = vmatpush.bf16.xpose.msra.mxu3 %v937_v57 }
 0x16a   : > { %1874 = vmatmul.msk.bf16.vlgmr.msrb.gmra.mxu3 %vm894_vm1, %v837_v63 }
 0x17a   : > { %1875 = vmatmul.msk.bf16.vlgmr.msra.gmra.mxu3 %vm894_vm1, %v838_v1 }
 0x1dd   : > { %v910_v3 = vpop.f32.mrf.mxu3 }
 0x1de   : > { %v911_v4 = vadd.f32 %v2217_v2, %v910_v3 }
 0x1df   : > { %v967_v5 = vpop.f32.mrf.mxu0 }
 0x1e0   : > { %v972_v6 = vsel %vm971_vm2, %v911_v4, -inf  ;;  %v968_v21 = vadd.f32 %v2217_v2, %v967_v5 }
 0x1e1   : > { %973 = vmax.xlane.f32.xlu0 %v972_v6 }
 0x1e2   : > { %v981_v24 = vsel %vm971_vm2, %v968_v21, -inf }
 0x1e5   : > { %v912_v8 = vpop.f32.mrf.mxu3 }
 0x1e7   : > { %v969_v9 = vpop.f32.mrf.mxu0 }
 0x1ed   : > { %v929_v11 = vpop.f32.mrf.mxu3 }
 0x1ee   : > { %v930_v12 = vadd.f32 %v2217_v2, %v929_v11 }
 0x1f0   : > { %v975_v13 = vsel %vm971_vm2, %v930_v12, -inf }
 0x1f1   : > { %976 = vmax.xlane.f32.xlu1 %v975_v13 }
 0x1f5   : > { %v931_v14 = vpop.f32.mrf.mxu3 }
 0x1fd   : > { %v948_v15 = vpop.f32.mrf.mxu3 }
 0x1fe   : > { %v949_v17 = vadd.f32 %v2217_v2, %v948_v15 }
 0x200   : > { %v978_v19 = vsel %vm971_vm2, %v949_v17, -inf }
 0x201   : > { %979 = vmax.xlane.f32.xlu2 %v978_v19 }
 0x205   : > { %v950_v22 = vpop.f32.mrf.mxu3 }
 0x209   : > { %982 = vmax.xlane.f32.xlu2 %v981_v24 }
 0x20a   : > { %868 = vrot.lane.b32.xlu1 %v867_v23, %s2516_s21 }
 0x254   : > { %v974_v25 = vpop.xlane.xlu0 %973 }
 0x255   : > { %v984_v26 = vsub.f32 %v911_v4, %v974_v25 }
 0x257   : > { %v988_v27 = vmul.f32 1.442695, %v984_v26 }
 0x259   : > { %2223 = vpow2.f32 %v988_v27 }
 0x25f   : > { %v2224_v28 = vpop.eup %2223 }
 0x260   : > { %v996_v29 = vsel %vm971_vm2, %v2224_v28, 0.0 }
 0x261   : > { %997 = vadd.xlane.f32.xlu0 %v996_v29 }
 0x264   : > { %v977_v30 = vpop.xlane.xlu1 %976 }
 0x265   : > { %v985_v41 = vsub.f32 %v930_v12, %v977_v30 }
 0x267   : > { %v990_v48 = vmul.f32 1.442695, %v985_v41 }
 0x274   : > { %v980_v31 = vpop.xlane.xlu2 %979 }
 0x275   : > { %v986_v32 = vsub.f32 %v949_v17, %v980_v31 }
 0x277   : > { %v992_v33 = vmul.f32 1.442695, %v986_v32 }
 0x279   : > { %2225 = vpow2.f32 %v992_v33 }
 0x27c   : > { %v869_v34 = vpop.permute.xlu1 %868  ;;  %v983_v35 = vpop.xlane.xlu2 %982 }
 0x27d   : > { %v876_v36 = vsel %vm823_vm0, %v813_v18, %v869_v34  ;;  %v987_v37 = vsub.f32 %v968_v21, %v983_v35 }
 0x27e   : > { %v882_v38 = vunpack.c.l.b16 %v876_v36  ;;  %v883_v39 = vunpack.c.h.b16 %v876_v36 }
 0x27f   : > { %v2769_v40 = vpop.eup %2225  ;;  %v994_v42 = vmul.f32 1.442695, %v987_v37 }
 0x280   : > { %v887_v43 = vpack.c.b16 %v883_v39, %v883_v39  ;;  %v1002_v44 = vsel %vm971_vm2, %v2769_v40, 0.0  ;;  %v886_v45 = vpack.c.b16 %v882_v38, %v882_v38 }
 0x281   : > { %2227 = vpow2.f32 %v994_v42  ;;  %1003 = vadd.xlane.f32.xlu0 %v1002_v44 }
 0x282   : > { %v1076_v46 = vsel %vm823_vm0, %v886_v45, 0  ;;  %v1095_v47 = vsel %vm823_vm0, %v887_v43, 0  ;;  %2229 = vpow2.f32 %v990_v48 }
 0x283   : > { %1085 = vmatpush.bf16.msrb.mxu2 %v1076_v46 }
 0x287   : > { %1104 = vmatpush.bf16.msra.mxu2 %v1095_v47  ;;  %v2775_v49 = vpop.eup %2227 }
 0x288   : > { %v1005_v50 = vsel %vm971_vm2, %v2775_v49, 0.0  ;;  %v2779_v51 = vpop.eup %2229 }
 0x289   : > { %1006 = vadd.xlane.f32.xlu2 %v1005_v50  ;;  %v999_v52 = vsel %vm971_vm2, %v2779_v51, 0.0 }
 0x291   : > { %1000 = vadd.xlane.f32.xlu2 %v999_v52 }
 0x295   : > { %870 = vrot.lane.b32.xlu0 %v867_v23, %s2515_s5 }
 0x2a9   : > { %872 = vrot.lane.b32.xlu2 %v867_v23, %s2517_s13 }
 0x2d4   : > { %v998_v53 = vpop.xlane.xlu0 %997 }
 0x2d5   : > { %2231 = vrcp.f32 %v998_v53  ;;  %v1019_v57 = vand.u32 2147483648, %v998_v53  ;;  %v1017_v59 = vand.u32 2147483647, %v998_v53  ;;  %vm1013_vm4 = vweird.f32 %v998_v53 }
 0x2d7   : > { %v1020_v61 = vor.u32 1.1754944e-38, %v1019_v57  ;;  %vm1018_vm6 = vcmp.eq.f32.partialorder %v1017_v59, 8.507059e+37 }
 0x2db   : > { %v2232_v54 = vpop.eup %2231 }
 0x2dc   : > { %v1009_v55 = vmul.f32 %v2232_v54, %v998_v53  ;;  %vm1014_vm3 = vweird.f32 %v2232_v54 }
 0x2dd   : > { %vm1015_vm5 = vmor %vm1013_vm4, %vm1014_vm3 }
 0x2de   : > { %v1010_v56 = vsub.f32 1.0, %v1009_v55  ;;  %v2075_v55 = vld [vmem:[#allocation8 + $0x30] sm:$0xff] }
 0x2e0   : > { %v1011_v58 = vmul.f32 %v2232_v54, %v1010_v56  ;;  %v2074_v56 = vld [vmem:[#allocation8 + $0x28] sm:$0xff] }
 0x2e2   : > { %v1012_v60 = vadd.f32 %v2232_v54, %v1011_v58 }
 0x2e4   : > { %v1016_v62 = vsel %vm1015_vm5, %v2232_v54, %v1012_v60  ;;  %v2076_v54 = vld [vmem:[#allocation8 + $0x38] sm:$0xff] }
 0x2e5   : > { %v1021_v63 = vsel %vm1018_vm6, %v1020_v61, %v1016_v62  ;;  %1241 = vmatpush.bf16.msrb.mxu1 %v2076_v54  ;;  %v2085_v54 = vld [vmem:[#allocation10 + $0x44] sm:$0xf] }
 0x2e6   : > { %v1064_v0 = vmul.f32 %v2224_v28, %v1021_v63 }
 0x2e8   : > { %v1068_v1 = vpack.c.bf16 %v1064_v0, %v1064_v0 }
 0x2e9   : > { %1242 = vmatpush.bf16.msrb.mxu1 %v2075_v55 }
 0x2ea   : > { %1877 = vmatmul.msk.bf16.vlgmr.msrb.gmra.mxu2 %vm971_vm2, %v1068_v1 }
 0x2ed   : > { %1243 = vmatpush.bf16.msrb.mxu1 %v2074_v56  ;;  %v1949_v56 = vld [vmem:[#allocation10 + $0x48] sm:$0xf0] }
 0x2f4   : > { %v1004_v2 = vpop.xlane.xlu0 %1003 }
 0x2f5   : > { %2233 = vrcp.f32 %v1004_v2  ;;  %v1047_v12 = vand.u32 2147483648, %v1004_v2  ;;  %vm1041_vm8 = vweird.f32 %v1004_v2  ;;  %v1045_v14 = vand.u32 2147483647, %v1004_v2 }
 0x2f7   : > { %v1048_v20 = vor.u32 1.1754944e-38, %v1047_v12  ;;  %vm1046_vm12 = vcmp.eq.f32.partialorder %v1045_v14, 8.507059e+37 }
 0x2fb   : > { %v2234_v3 = vpop.eup %2233 }
 0x2fc   : > { %v1037_v4 = vmul.f32 %v2234_v3, %v1004_v2  ;;  %v1007_v5 = vpop.xlane.xlu2 %1006  ;;  %vm1042_vm7 = vweird.f32 %v2234_v3 }
 0x2fd   : > { %2235 = vrcp.f32 %v1007_v5  ;;  %v1061_v15 = vand.u32 2147483648, %v1007_v5  ;;  %vm1043_vm9 = vmor %vm1041_vm8, %vm1042_vm7  ;;  %v1059_v18 = vand.u32 2147483647, %v1007_v5  ;;  %vm1055_vm11 = vweird.f32 %v1007_v5 }
 0x2fe   : > { %v1038_v6 = vsub.f32 1.0, %v1037_v4 }
 0x2ff   : > { %v1062_v23 = vor.u32 1.1754944e-38, %v1061_v15  ;;  %vm1060_vm14 = vcmp.eq.f32.partialorder %v1059_v18, 8.507059e+37 }
 0x300   : > { %v1039_v7 = vmul.f32 %v2234_v3, %v1038_v6 }
 0x302   : > { %v1040_v11 = vadd.f32 %v2234_v3, %v1039_v7  ;;  %v2073_v7 = vld [vmem:[#allocation8 + $0x20] sm:$0xff] }
 0x303   : > { %v2236_v8 = vpop.eup %2235  ;;  %1244 = vmatpush.bf16.msrb.mxu1 %v2073_v7  ;;  %v2079_v7 = vld [vmem:[#allocation10 + $0x14] sm:$0xf] }
 0x304   : > { %v1051_v9 = vmul.f32 %v2236_v8, %v1007_v5  ;;  %v1001_v10 = vpop.xlane.xlu2 %1000  ;;  %vm1056_vm10 = vweird.f32 %v2236_v8  ;;  %v1044_v19 = vsel %vm1043_vm9, %v2234_v3, %v1040_v11  ;;  %v2069_v11 = vld [vmem:[#allocation8] sm:$0xff] }
 0x305   : > { %2237 = vrcp.f32 %v1001_v10  ;;  %vm1057_vm13 = vmor %vm1055_vm11, %vm1056_vm10  ;;  %v1049_v24 = vsel %vm1046_vm12, %v1048_v20, %v1044_v19  ;;  %v1031_v35 = vand.u32 2147483647, %v1001_v10  ;;  %v1033_v36 = vand.u32 2147483648, %v1001_v10 }
 0x306   : > { %v1052_v13 = vsub.f32 1.0, %v1051_v9  ;;  %v1066_v34 = vmul.f32 %v2769_v40, %v1049_v24  ;;  %vm1027_vm3 = vweird.f32 %v1001_v10  ;;  %v2071_v9 = vld [vmem:[#allocation8 + $0x10] sm:$0xff] }
 0x307   : > { %v871_v27 = vpop.permute.xlu0 %870  ;;  %v1034_v45 = vor.u32 1.1754944e-38, %v1033_v36  ;;  %vm1032_vm5 = vcmp.eq.f32.partialorder %v1031_v35, 8.507059e+37  ;;  %v1971_v24 = vld [vmem:[#allocation10 + $0x70] sm:$0xf] }
 0x308   : > { %v1053_v17 = vmul.f32 %v2236_v8, %v1052_v13  ;;  %v1070_v40 = vpack.c.bf16 %v1066_v34, %v1066_v34 }
 0x30a   : > { %v1054_v21 = vadd.f32 %v2236_v8, %v1053_v17 }
 0x30b   : > { %v2238_v22 = vpop.eup %2237 }
 0x30c   : > { %v1058_v25 = vsel %vm1057_vm13, %v2236_v8, %v1054_v21  ;;  %v1023_v26 = vmul.f32 %v2238_v22, %v1001_v10  ;;  %v873_v28 = vpop.permute.xlu2 %872  ;;  %vm1028_vm15 = vweird.f32 %v2238_v22  ;;  %v2072_v8 = vld [vmem:[#allocation8 + $0x18] sm:$0xff]  ;;  %v2070_v10 = vld [vmem:[#allocation8 + $0x8] sm:$0xff] }
 0x30d   : > { %v1063_v29 = vsel %vm1060_vm14, %v1062_v23, %v1058_v25  ;;  %v879_v30 = vsel %vm823_vm0, %v871_v27, %v873_v28  ;;  %vm1029_vm4 = vmor %vm1027_vm3, %vm1028_vm15  ;;  %1245 = vmatpush.bf16.msrb.mxu1 %v2072_v8  ;;  %v2518_v23 = vmov 128.0   ;;  %v2092_v25 = vld [vmem:[#allocation10 + $0x74] sm:$0xf0]  ;;  %v1973_v28 = vld [vmem:[#allocation10 + $0x78] sm:$0xf0] }
 0x30e   : > { %v1024_v31 = vsub.f32 1.0, %v1023_v26  ;;  %v884_v32 = vunpack.c.l.b16 %v879_v30  ;;  %v885_v33 = vunpack.c.h.b16 %v879_v30  ;;  %v1067_v37 = vmul.f32 %v2775_v49, %v1063_v29  ;;  %v2091_v26 = vld [vmem:[#allocation10 + $0x74] sm:$0xf] }
 0x30f   : > { %2239 = vrcp.f32 %v2518_v23  ;;  %v1972_v27 = vor.u32 %v2092_v25, %v1971_v24  ;;  %v1976_v29 = vor.u32 %v2091_v26, %v1973_v28  ;;  %v2107_v23 = vld [vmem:[#allocation11 + $0x70] sm:$0xff]  ;;  %v2098_v25 = vld [vmem:[#allocation11 + $0x28] sm:$0xff]  ;;  %v2105_v28 = vld [vmem:[#allocation11 + $0x60] sm:$0xff] }
 0x310   : > { %v1025_v38 = vmul.f32 %v2238_v22, %v1024_v31  ;;  %v888_v39 = vpack.c.b16 %v884_v32, %v884_v32  ;;  %v889_v41 = vpack.c.b16 %v885_v33, %v885_v33  ;;  %v1071_v47 = vpack.c.bf16 %v1067_v37, %v1067_v37  ;;  %v2106_v26 = vld [vmem:[#allocation11 + $0x68] sm:$0xff] }
 0x311   : > { %1246 = vmatpush.bf16.msrb.mxu1 %v2071_v9  ;;  %1395 = vmatpush.bf16.msrb.mxu2 %v1972_v27  ;;  %v1925_v9 = vld [vmem:[#allocation10 + $0x18] sm:$0xf0]  ;;  %v2097_v27 = vld [vmem:[#allocation11 + $0x20] sm:$0xff] }
 0x312   : > { %v1026_v42 = vadd.f32 %v2238_v22, %v1025_v38  ;;  %v1114_v43 = vsel %vm823_vm0, %v888_v39, 0  ;;  %v1133_v44 = vsel %vm823_vm0, %v889_v41, 0  ;;  %vm1170_vm0 = vcmask 523264   ;;  %v1963_v39 = vld [vmem:[#allocation10 + $0x60] sm:$0xf] }
 0x313   : > { %1123 = vmatpush.bf16.msrb.mxu3 %v1114_v43  ;;  %1142 = vmatpush.bf16.msra.mxu0 %v1133_v44  ;;  %v2090_v41 = vld [vmem:[#allocation10 + $0x64] sm:$0xf0]  ;;  %v1965_v44 = vld [vmem:[#allocation10 + $0x68] sm:$0xf0] }
 0x314   : > { %v1030_v46 = vsel %vm1029_vm4, %v2238_v22, %v1026_v42  ;;  %v2089_v42 = vld [vmem:[#allocation10 + $0x64] sm:$0xf]  ;;  %v1964_v43 = vor.u32 %v2090_v41, %v1963_v39  ;;  %v2218_v41 = vld [vmem:[%s2867_s6] ss:$0 sm:$0xff] }
 0x315   : > { %v1035_v48 = vsel %vm1032_vm5, %v1034_v45, %v1030_v46  ;;  %1247 = vmatpush.bf16.msrb.mxu1 %v2070_v10  ;;  %v2240_v30 = vpop.eup %2239  ;;  %v1968_v45 = vor.u32 %v2089_v42, %v1965_v44  ;;  %v1955_v46 = vld [vmem:[#allocation10 + $0x50] sm:$0xf]  ;;  %v1915_v10 = vld [vmem:[#allocation10] sm:$0xf] }
 0x316   : > { %v1065_v49 = vmul.f32 %v2779_v51, %v1035_v48  ;;  %1879 = vmatmul.msk.bf16.vlgmr.msrb.gmra.mxu3 %vm971_vm2, %v1070_v40  ;;  %1880 = vmatmul.msk.bf16.vlgmr.msra.gmra.mxu0 %vm971_vm2, %v1071_v47  ;;  %v1260_v31 = vmul.f32 128.0, %v2240_v30  ;;  %v2088_v40 = vld [vmem:[#allocation10 + $0x54] sm:$0xf0]  ;;  %v2087_v47 = vld [vmem:[#allocation10 + $0x54] sm:$0xf] }
 0x317   : > { %1408 = vmatpush.bf16.msra.mxu3 %v1976_v29  ;;  %1396 = vmatpush.bf16.msrb.mxu2 %v1964_v43  ;;  %v1956_v48 = vor.u32 %v2088_v40, %v1955_v46  ;;  %v2219_v44 = vld [vmem:[%s2868_s7] ss:$0 sm:$0xff] }
 0x318   : > { %v1069_v50 = vpack.c.bf16 %v1065_v49, %v1065_v49  ;;  %v1261_v32 = vsub.f32 1.0, %v1260_v31  ;;  %v1957_v49 = vld [vmem:[#allocation10 + $0x58] sm:$0xf0] }
 0x319   : > { %1248 = vmatpush.bf16.msrb.mxu1 %v2069_v11  ;;  %v2078_v11 = vld [vmem:[#allocation10 + $0x4] sm:$0xf0]  ;;  %v2096_v31 = vld [vmem:[#allocation11 + $0x18] sm:$0xff] }
 0x31a   : > { %1878 = vmatmul.msk.bf16.vlgmr.msra.gmra.mxu2 %vm971_vm2, %v1069_v50  ;;  %vm1173_vm2 = vcmask 785408   ;;  %v1262_v33 = vmul.f32 %v2240_v30, %v1261_v32  ;;  %v1960_v50 = vor.u32 %v2087_v47, %v1957_v49  ;;  %v2104_v32 = vld [vmem:[#allocation11 + $0x58] sm:$0xff]  ;;  %v2094_v47 = vld [vmem:[#allocation11 + $0x8] sm:$0xff]  ;;  %v2093_v49 = vld [vmem:[#allocation11] sm:$0xff] }
 0x31b   : > { %1409 = vmatpush.bf16.msra.mxu3 %v1968_v45  ;;  %1397 = vmatpush.bf16.msrb.mxu2 %v1956_v48  ;;  %v2102_v48 = vld [vmem:[#allocation11 + $0x48] sm:$0xff] }
 0x31c   : > { %v1263_v34 = vadd.f32 %v2240_v30, %v1262_v33 }
 0x31f   : > { %1410 = vmatpush.bf16.msra.mxu3 %v1960_v50  ;;  %v2101_v50 = vld [vmem:[#allocation11 + $0x40] sm:$0xff] }
 0x36d   : > { %v1087_v52 = vpop.f32.mrf.mxu2 }
 0x36e   : > { %v1148_v13 = vpack.c.bf16 %v1087_v52, %v1087_v52  ;;  %v1947_v52 = vld [vmem:[#allocation10 + $0x40] sm:$0xf] }
 0x375   : > { %v1089_v53 = vpop.f32.mrf.mxu2 }
 0x376   : > { %v2086_v53 = vld [vmem:[#allocation10 + $0x44] sm:$0xf0] }
 0x377   : > { %v1948_v55 = vor.u32 %v2086_v53, %v1947_v52 }
 0x379   : > { %1398 = vmatpush.bf16.msrb.mxu2 %v1948_v55 }
 0x393   : > { %v1144_v57 = vpop.f32.mrf.mxu0 }
 0x394   : > { %v1151_v58 = vpack.c.bf16 %v1144_v57, %v1144_v57  ;;  %v1952_v57 = vor.u32 %v2085_v54, %v1949_v56 }
 0x396   : > { %v1163_v59 = vunpack.c.l.b16 %v1151_v58  ;;  %1411 = vmatpush.bf16.msra.mxu3 %v1952_v57  ;;  %v1939_v58 = vld [vmem:[#allocation10 + $0x30] sm:$0xf] }
 0x398   : > { %v1164_v60 = vpack.c.b16 %v1163_v59, %v1163_v59  ;;  %v2084_v59 = vld [vmem:[#allocation10 + $0x34] sm:$0xf0] }
 0x399   : > { %v1125_v51 = vpop.f32.mrf.mxu3 }
 0x39a   : > { %1165 = vrot.lane.b32.xlu0 %v1164_v60, %s2516_s21  ;;  %v1150_v2 = vpack.c.bf16 %v1125_v51, %v1125_v51  ;;  %v2083_v60 = vld [vmem:[#allocation10 + $0x34] sm:$0xf]  ;;  %v1940_v51 = vor.u32 %v2084_v59, %v1939_v58 }
 0x39b   : > { %v1146_v61 = vpop.f32.mrf.mxu0 }
 0x39c   : > { %v1158_v5 = vunpack.c.l.b16 %v1150_v2  ;;  %v1941_v61 = vld [vmem:[#allocation10 + $0x38] sm:$0xf0]  ;;  %1399 = vmatpush.bf16.msrb.mxu2 %v1940_v51 }
 0x39d   : > { %v1106_v62 = vpop.f32.mrf.mxu2 }
 0x39e   : > { %v1149_v63 = vpack.c.bf16 %v1106_v62, %v1106_v62  ;;  %v1159_v6 = vpack.c.b16 %v1158_v5, %v1158_v5  ;;  %v1944_v62 = vor.u32 %v2083_v60, %v1941_v61  ;;  %v1923_v5 = vld [vmem:[#allocation10 + $0x10] sm:$0xf] }
 0x3a0   : > { %v1153_v0 = vunpack.c.l.b16 %v1149_v63  ;;  %1412 = vmatpush.bf16.msra.mxu3 %v1944_v62  ;;  %v1931_v63 = vld [vmem:[#allocation10 + $0x20] sm:$0xf] }
 0x3a1   : > { %v1127_v1 = vpop.f32.mrf.mxu3 }
 0x3a2   : > { %v1154_v3 = vpack.c.b16 %v1153_v0, %v1153_v0  ;;  %v2082_v0 = vld [vmem:[#allocation10 + $0x24] sm:$0xf0]  ;;  %v2081_v1 = vld [vmem:[#allocation10 + $0x24] sm:$0xf] }
 0x3a3   : > { %v1932_v2 = vor.u32 %v2082_v0, %v1931_v63  ;;  %v2220_v63 = vld [vmem:[%s2872_s11] ss:$0 sm:$0xff] }
 0x3a4   : > { %1155 = vrot.lane.b32.xlu1 %v1154_v3, %s2517_s13  ;;  %v1933_v3 = vld [vmem:[#allocation10 + $0x28] sm:$0xf0]  ;;  %s2042_s13 = sshll.u32 %s2615_s17, 3 }
 0x3a5   : > { %v1108_v4 = vpop.f32.mrf.mxu2  ;;  %1400 = vmatpush.bf16.msrb.mxu2 %v1932_v2  ;;  %s1626_s19 = scalar_lea.hbm %s2875_s14, %s2042_s13 }
 0x3a6   : > { %v1936_v4 = vor.u32 %v2081_v1, %v1933_v3  ;;  %s1630_s22 = sshll.u32 %s1626_s19, 4  ;;  %s1631_s22 = int_to_ptr.hbm [resolvable:$true] %s1630_s22 }
 0x3a7   : > { %s2439_s26 = sshra.s32 %s1631_s22, 4  ;;  %s2440_s26 = int_to_ptr.hbm [resolvable:$true] %s2439_s26 }
 0x3a8   : > { %1413 = vmatpush.bf16.msra.mxu3 %v1936_v4  ;;  %s2441_s27 = scalar_lea.hbm %s2440_s26, 8  ;;  %p2446_p3 = scmp.lt.s32.totalorder %s2440_s26, %s2875_s14 }
 0x3a9   : > { %p2442_p0 = scmp.ne.s32.totalorder %s2440_s26, %s2441_s27  ;;  %p2447_p4 = scmp.lt.s32.totalorder %s2445_s20, %s2441_s27 }
 0x3ab   : > { %p2443_p1 = pnand %p2442_p0, %p2632_p5  ;;  %p2448_p7 = por %p2447_p4, %p2446_p3 }
 0x3ac   : > { %1160 = vrot.lane.b32.xlu1 %v1159_v6, %s2515_s5  ;;  %v2080_v6 = vld [vmem:[#allocation10 + $0x14] sm:$0xf0]  ;;  %s567_s5 = sand.u32 1, %s2495_s30  }
 0x3ad   : > { %v1924_v8 = vor.u32 %v2080_v6, %v1923_v5  ;;  %s1775_s21 = sshll.u32 %s567_s5, 3  ;;  %s1616_s25 = scalar_lea.sflag [#allocation4], %s567_s5 }
 0x3ae   : > { %s569_s16 = scalar_lea.vmem [#allocation13], %s1775_s21  ;;  %p2444_p2 = pneg %p2443_p1 }
 0x3af   : > { %1401 = vmatpush.bf16.msrb.mxu2 %v1924_v8  ;;  %s1628_s17 = sshll.u32 %s569_s16, 4  ;;  %s1629_s17 = int_to_ptr.vmem [resolvable:$true] %s1628_s17 }
 0x3b0   : > { %p2449_p8 = pnand %p2448_p7, %p2444_p2 }
 0x40c   : > { %v1166_v17 = vpop.permute.xlu0 %1165 }
 0x416   : > { %v1156_v12 = vpop.permute.xlu1 %1155 }
 0x417   : > { %v1169_v14 = vsel %vm894_vm1, %v1148_v13, %v1156_v12  ;;  %vm1264_vm1 = vweird.f32 %v2240_v30  ;;  %v1928_v12 = vor.u32 %v2079_v7, %v1925_v9  ;;  %v2077_v13 = vld [vmem:[#allocation10 + $0x4] sm:$0xf] }
 0x418   : > { %v2800_v35 = vsel %vm1264_vm1, %v2240_v30, %v1263_v34 }
 0x419   : > { %1414 = vmatpush.bf16.msra.mxu3 %v1928_v12 }
 0x41e   : > { %v1161_v15 = vpop.permute.xlu1 %1160 }
 0x41f   : > { %v1172_v18 = vsel %vm1170_vm0, %v1169_v14, %v1161_v15  ;;  %v1917_v14 = vld [vmem:[#allocation10 + $0x8] sm:$0xf0]  ;;  %v1916_v15 = vor.u32 %v2078_v11, %v1915_v10 }
 0x420   : > { %v1175_v19 = vsel %vm1173_vm2, %v1172_v18, %v1166_v17  ;;  %v1920_v17 = vor.u32 %v2077_v13, %v1917_v14  ;;  %v2100_v18 = vld [vmem:[#allocation11 + $0x38] sm:$0xff] }
 0x421   : > { %1249 = vmatmul.bf16.vlgmr.msrb.gmra.mxu1 %v1175_v19  ;;  %1402 = vmatpush.bf16.msrb.mxu2 %v1916_v15  ;;  %v2108_v19 = vld [vmem:[#allocation11 + $0x78] sm:$0xff] }
 0x422   : > { %1415 = vmatpush.bf16.msra.mxu3 %v1920_v17  ;;  %1557 = vmatpush.bf16.msrb.mxu0 %v2100_v18 }
 0x423   : > { %1570 = vmatpush.bf16.msra.mxu1 %v2108_v19 }
 0x427   : > { %1571 = vmatpush.bf16.msra.mxu1 %v2107_v23  ;;  %v2222_v23 = vld [vmem:[%s2897_s18] ss:$0 sm:$0xff] }
 0x42b   : > { %1572 = vmatpush.bf16.msra.mxu1 %v2106_v26 }
 0x42f   : > { %1573 = vmatpush.bf16.msra.mxu1 %v2105_v28 }
 0x433   : > { %1574 = vmatpush.bf16.msra.mxu1 %v2104_v32 }
 0x49e   : > { %v1250_v20 = vpop.f32.mrf.mxu1 }
 0x49f   : > { %v1254_v21 = vadd.f32 %v1250_v20, %v2726_v16 }
 0x4a1   : > { %1257 = vadd.xlane.f32.xlu1 %v1254_v21 }
 0x4a6   : > { %v1252_v22 = vpop.f32.mrf.mxu1 }
 0x4a7   : > { %v2099_v22 = vld [vmem:[#allocation11 + $0x30] sm:$0xff] }
 0x4a8   : > { %1558 = vmatpush.bf16.msrb.mxu0 %v2099_v22 }
 0x4ac   : > { %1559 = vmatpush.bf16.msrb.mxu0 %v2098_v25 }
 0x4b0   : > { %1560 = vmatpush.bf16.msrb.mxu0 %v2097_v27 }
 0x4b4   : > { %1561 = vmatpush.bf16.msrb.mxu0 %v2096_v31 }
 0x514   : > { %v1258_v16 = vpop.xlane.xlu1 %1257 }
 0x515   : > { %v1266_v36 = vmul.f32 %v2800_v35, %v1258_v16  ;;  %v2095_v16 = vld [vmem:[#allocation11 + $0x10] sm:$0xff] }
 0x516   : > { %1562 = vmatpush.bf16.msrb.mxu0 %v2095_v16 }
 0x517   : > { %v2803_v37 = vsub.f32 %v1254_v21, %v1266_v36  ;;  %v2103_v36 = vld [vmem:[#allocation11 + $0x50] sm:$0xff] }
 0x518   : > { %1575 = vmatpush.bf16.msra.mxu1 %v2103_v36 }
 0x519   : > { %v1268_v38 = vmul.f32 %v2803_v37, %v2803_v37 }
 0x51a   : > { %1563 = vmatpush.bf16.msrb.mxu0 %v2094_v47 }
 0x51b   : > { %1269 = vadd.xlane.f32.xlu0 %v1268_v38 }
 0x51c   : > { %1576 = vmatpush.bf16.msra.mxu1 %v2102_v48 }
 0x51e   : > { %1564 = vmatpush.bf16.msrb.mxu0 %v2093_v49 }
 0x520   : > { %1577 = vmatpush.bf16.msra.mxu1 %v2101_v50 }
 0x58e   : > { %v1270_v20 = vpop.xlane.xlu0 %1269 }
 0x58f   : > { %v1271_v21 = vmul.f32 %v1270_v20, %v2800_v35 }
 0x591   : > { %v1272_v24 = vadd.f32 1e-12, %v1271_v21  ;;  %v2221_v21 = vld [vmem:[%s2873_s12] ss:$0 sm:$0xff] }
 0x593   : > { %2241 = vrsqrt.f32 %v1272_v24  ;;  %vm1279_vm7 = vweird.f32 %v1272_v24 }
 0x599   : > { %v2242_v29 = vpop.eup %2241 }
 0x59a   : > { %v1274_v30 = vmul.f32 %v2242_v29, %v1272_v24  ;;  %vm1280_vm6 = vweird.f32 %v2242_v29 }
 0x59b   : > { %vm1281_vm8 = vmor %vm1279_vm7, %vm1280_vm6 }
 0x59c   : > { %v1275_v33 = vmul.f32 %v2242_v29, %v1274_v30 }
 0x59e   : > { %v1276_v34 = vmul.f32 0.5, %v1275_v33 }
 0x5a0   : > { %v1277_v38 = vsub.f32 1.5, %v1276_v34 }
 0x5a2   : > { %v1278_v39 = vmul.f32 %v2242_v29, %v1277_v38 }
 0x5a4   : > { %v1282_v42 = vsel %vm1281_vm8, %v2242_v29, %v1278_v39 }
 0x5a5   : > { %v1283_v43 = vmul.f32 %v1282_v42, %v2803_v37  ;;  %v1309_v37 = vld [vmem:[%s2870_s9] sm:$0x3] }
 0x5a6   : > { %v1311_v52 = vperm.slane %v1309_v37, 0  ;;  %v1312_v53 = vperm.slane %v1309_v37, 1 }
 0x5a7   : > { %v1287_v45 = vmul.f32 %v2218_v41, %v1283_v43 }
 0x5a9   : > { %v1291_v46 = vadd.f32 %v2219_v44, %v1287_v45 }
 0x5ab   : > { %v1292_v40 = vpack.c.bf16 %v1291_v46, %v1291_v46 }
 0x5ad   : > { %1403 = vmatmul.bf16.vlgmr.msrb.gmra.mxu2 %v1292_v40  ;;  %1416 = vmatmul.bf16.vlgmr.msra.gmra.mxu3 %v1292_v40 }
 0x630   : > { %v1404_v54 = vpop.f32.mrf.mxu2  ;;  %v1417_v55 = vpop.f32.mrf.mxu3 }
 0x631   : > { %v1405_v56 = vadd.f32 %v1404_v54, %v1311_v52  ;;  %v1418_v57 = vadd.f32 %v1417_v55, %v1312_v53 }
 0x633   : > { %v1421_v58 = vmax.f32 %v1405_v56, 0.0  ;;  %v1422_v59 = vmax.f32 %v1418_v57, 0.0 }
 0x635   : > { %v1423_v60 = vpack.c.bf16 %v1421_v58, %v1421_v58  ;;  %v1424_v51 = vpack.c.bf16 %v1422_v59, %v1422_v59 }
 0x637   : > { %1565 = vmatmul.bf16.vlgmr.msrb.gmra.mxu0 %v1423_v60  ;;  %1578 = vmatmul.bf16.vlgmr.msra.gmra.mxu1 %v1424_v51 }
 0x638   : > { %v1406_v61 = vpop.f32.mrf.mxu2  ;;  %v1419_v62 = vpop.f32.mrf.mxu3 }
 0x6b4   : > { %v1566_v0 = vpop.f32.mrf.mxu0  ;;  %v1579_v1 = vpop.f32.mrf.mxu1 }
 0x6b5   : > { %v1567_v2 = vadd.f32 %v2220_v63, %v1566_v0 }
 0x6b7   : > { %v1580_v3 = vadd.f32 %v1579_v1, %v1567_v2 }
 0x6b9   : > { %v1583_v4 = vadd.f32 %v1580_v3, %v1291_v46 }
 0x6bb   : > { %1586 = vadd.xlane.f32.xlu2 %v1583_v4 }
 0x6bc   : > { %v1568_v5 = vpop.f32.mrf.mxu0  ;;  %v1581_v6 = vpop.f32.mrf.mxu1 }
 0x72e   : > { %v1587_v7 = vpop.xlane.xlu2 %1586 }
 0x72f   : > { %v1588_v8 = vmul.f32 %v1587_v7, %v2800_v35 }
 0x731   : > { %v1589_v9 = vsub.f32 %v1583_v4, %v1588_v8 }
 0x733   : > { %v1590_v10 = vmul.f32 %v1589_v9, %v1589_v9 }
 0x735   : > { %1591 = vadd.xlane.f32.xlu1 %v1590_v10 }
 0x7a8   : > { %v1592_v11 = vpop.xlane.xlu1 %1591 }
 0x7a9   : > { %v1593_v12 = vmul.f32 %v1592_v11, %v2800_v35 }
 0x7ab   : > { %v1594_v13 = vadd.f32 1e-12, %v1593_v12 }
 0x7ad   : > { %2243 = vrsqrt.f32 %v1594_v13  ;;  %vm1601_vm10 = vweird.f32 %v1594_v13 }
 0x7b3   : > { %v2244_v14 = vpop.eup %2243 }
 0x7b4   : > { %v1596_v15 = vmul.f32 %v2244_v14, %v1594_v13  ;;  %vm1602_vm9 = vweird.f32 %v2244_v14 }
 0x7b5   : > { %vm1603_vm11 = vmor %vm1601_vm10, %vm1602_vm9 }
 0x7b6   : > { %v1597_v17 = vmul.f32 %v2244_v14, %v1596_v15 }
 0x7b8   : > { %v1598_v18 = vmul.f32 0.5, %v1597_v17 }
 0x7ba   : > { %v1599_v19 = vsub.f32 1.5, %v1598_v18 }
 0x7bc   : > { %v1600_v20 = vmul.f32 %v2244_v14, %v1599_v19 }
 0x7be   : > { %v1604_v35 = vsel %vm1603_vm11, %v2244_v14, %v1600_v20 }
 0x7bf   : > { %v1605_v22 = vmul.f32 %v1604_v35, %v1589_v9 }
 0x7c1   : > { %v1609_v24 = vmul.f32 %v2221_v21, %v1605_v22 }
 0x7c3   : > { %v1613_v25 = vadd.f32 %v2222_v23, %v1609_v24 }
 0x7c5   : > { %1614 = vst [vmem:[%s569_s16] sm:$0xff] %v1613_v25 }
 0x7c6   : > { %2452 = shalt.err (!%p2449_p8)
}
 0x7c7   : > { %2133 = dma.vmem_to_hbm [thread:$0]  (%p2632_p5), %s1629_s17, 128, %s1631_s22, %s1616_s25  }
 0x7c8 PF: > { %s2898_s5 = sld [smem:[#allocation21_spill]] }
 0x7c9   : > { %s2899_s24 = sld [smem:[#allocation19_spill]] }
 0x7ce   : > { %p2170_p9 = scmp.ge.s32.totalorder %s2898_s5, 2 }
 0x7cf   : > { %s1642_s3 = sand.u32 1, %s2899_s24  }
 0x7d0   : > { %p2155_p10 = pnand %p2170_p9, %p2636_p6  ;;  %s1643_s28 = scalar_lea.sflag [#allocation4], %s1642_s3 }
 0x7d2   : > { %p2156_p11 = pneg %p2155_p10 }
 0x7d4   : > { %2486 = dma.done.wait (%p2156_p11), %s1643_s28, 128  }
 0x7d5   : > { %2488 = vsyncadd (%p2156_p11), %s1643_s28, 4294967168  ;;  %s2901_s16 = sld [smem:[#allocation22_spill]]  ;;  %s2904_s29 = smov %s2495_s30 }
 0x7d6   : > { %s2902_s18 = sld [smem:[#allocation20_spill]] }
 0x7d7   : > { %s2903_s15 = sld [smem:[#allocation23_spill]] }
 0x7db   : > { %p28_p12 = scmp.ge.s32.totalorder %s2901_s16, 4  }
 0x7dc   : > { %s2905_s30 = smov %s2902_s18 }
 0x7dd   :  { %30 = sbr.rel (!%p28_p12) target bundleno = 11 (0xb), region = 139 }
 0x7e2   :  { %1649 = vsyncpa [#allocation3], 1 }
 0x7e3   :  { %1651 = vsyncpa [#allocation3 + $0x1], 1 }
 0x7e4   :  { %1652 = vsyncpa [#allocation6], 1 }
 0x7e5   :  { %1653 = vsyncpa [#allocation9], 1 }
 0x7e6   :  { %1654 = vsyncpa [#allocation12], 1 }
 0x7e7   :  { %1655 = vsyncpa [#allocation4], 1 }
 0x7e8   :  { %1657 = vsyncpa [#allocation4 + $0x1], 1 }

</bundles_post_ra>
